<compile_context>
chip_gen: v7x
topology: tpu7x:2x2x1
jax: 0.10.0
libtpu: 0.0.40
codegen_flags: <defaults>
</compile_context>

<pallas_src>
import functools

import jax
import jax.numpy as jnp
from jax.experimental import pallas as pl
from jax.experimental.pallas import tpu as pltpu

BN_EPS = 1e-5
BN_SCALE = 1.0 / (1.0 + BN_EPS) ** 0.5  # eval-mode BN with mean=0, var=1, gamma=1, beta=0

_VMEM = pl.BlockSpec(memory_space=pltpu.MemorySpace.VMEM)


# ------------------------------ fused kernel ------------------------------- #

def _make_fused_kernel(n_str_lins, n_lstm_layers, T, H):
    """One kernel: structured MLP -> stacked LSTM (unrolled over T) -> heads.

    refs layout (all whole-array VMEM blocks):
      in : x_struct(B, Ds) | seq_flat(T*B, In)  [time-major] | h0(L, B, H)
           | [w, b] * n_str_lins | w_outp, b_outp
           | [wih, whh, b] * n_lstm_layers
           | lin_wm(H, lin), lin_wr(H, lin), lin_b(1, lin) | out_w(lin, o), out_b(1, o)
      out: o(B, o)
    Gate weights: wih:(In_l,4H), whh:(H,4H), b:(1,4H), PyTorch gate order i,f,g,o.
    """
    def kernel(*refs):
        idx = 0
        xs_ref = refs[idx]; idx += 1
        seq_ref = refs[idx]; idx += 1
        h0_ref = refs[idx]; idx += 1
        str_refs = refs[idx: idx + 2 * (n_str_lins + 1)]; idx += 2 * (n_str_lins + 1)
        lstm_refs = refs[idx: idx + 3 * n_lstm_layers]; idx += 3 * n_lstm_layers
        lin_wm_ref = refs[idx]; idx += 1
        lin_wr_ref = refs[idx]; idx += 1
        lin_b_ref = refs[idx]; idx += 1
        out_w_ref = refs[idx]; idx += 1
        out_b_ref = refs[idx]; idx += 1
        o_ref = refs[idx]

        # ---- StructuredNet MLP chain (eval-mode BN pre-folded into w/b) ----
        x = xs_ref[...]
        for i in range(n_str_lins):
            w = str_refs[2 * i][...]
            b = str_refs[2 * i + 1][...]
            x = jnp.maximum(jnp.dot(x, w, preferred_element_type=jnp.float32) + b, 0.0)
        w = str_refs[2 * n_str_lins][...]
        b = str_refs[2 * n_str_lins + 1][...]
        metadata = jnp.dot(x, w, preferred_element_type=jnp.float32) + b      # (B, H)
        B = metadata.shape[0]

        # ---- stacked LSTM, layer-by-layer; input projection hoisted ----
        layer_in = seq_ref[...]                        # (T*B, In_0), time-major rows
        h_last = None
        for l in range(n_lstm_layers):
            wih = lstm_refs[3 * l][...]                # (In_l, 4H)
            whh = lstm_refs[3 * l + 1][...]            # (H, 4H)
            bias = lstm_refs[3 * l + 2][...]           # (1, 4H)
            # One tall matmul for all T steps (fills MXU rows), off the serial path.
            xp = jnp.dot(layer_in, wih, preferred_element_type=jnp.float32) + bias
            h = h0_ref[l]                              # (B, H)
            c = metadata                               # cell init = structured-net output
            outs = []
            for t in range(T):                         # statically unrolled recurrence
                gates = xp[t * B:(t + 1) * B, :] + jnp.dot(
                    h, whh, preferred_element_type=jnp.float32)               # (B, 4H)
                sg = jax.nn.sigmoid(gates)             # full-vreg EUP transcendentals
                th = jnp.tanh(gates)
                i_g = sg[:, 0:H]
                f_g = sg[:, H:2 * H]
                g_g = th[:, 2 * H:3 * H]
                o_g = sg[:, 3 * H:4 * H]
                c = f_g * c + i_g * g_g
                h = o_g * jnp.tanh(c)
                outs.append(h)
            h_last = h
            if l + 1 < n_lstm_layers:
                # eval-mode: inter-layer LSTM dropout is identity
                layer_in = jnp.concatenate(outs, axis=0)   # (T*B, H), time-major

        # ---- heads: split lin weight -> two dots (no (B, 2H) concat) ----
        y = (jnp.dot(metadata, lin_wm_ref[...], preferred_element_type=jnp.float32)
             + jnp.dot(h_last, lin_wr_ref[...], preferred_element_type=jnp.float32)
             + lin_b_ref[...])
        y = jnp.maximum(y, 0.0)                        # BN after ReLU folded into lin w/b
        out = jnp.dot(y, out_w_ref[...], preferred_element_type=jnp.float32) + out_b_ref[...]
        o_ref[...] = out.astype(o_ref.dtype)

    return kernel


# --------------------------- parameter construction ------------------------ #

def _kaiming_linear(key, in_f, out_f, *, bn_fold=False):
    kw, kb = jax.random.split(key)
    std = (2.0 / in_f) ** 0.5                       # kaiming_normal_ (fan_in, gain sqrt(2))
    w = std * jax.random.normal(kw, (out_f, in_f), jnp.float32)
    bound = 1.0 / (in_f ** 0.5)                     # PyTorch default bias init
    b = jax.random.uniform(kb, (out_f,), jnp.float32, -bound, bound)
    w = w.T                                         # stored transposed: (in, out)
    b = b.reshape(1, out_f)
    if bn_fold:                                     # fold eval-mode BN (after the ReLU)
        w = w * BN_SCALE
        b = b * BN_SCALE
    return w, b


def _embedding(key, num, dim):
    sc = 2.0 / (dim + 1)                            # emb_init
    return jax.random.uniform(key, (num, dim), jnp.float32, -sc, sc)


def _lstm_layer(key, in_f, hid):
    k = 1.0 / (hid ** 0.5)
    k1, k2, k3, k4 = jax.random.split(key, 4)
    w_ih = jax.random.uniform(k1, (4 * hid, in_f), jnp.float32, -k, k)
    w_hh = jax.random.uniform(k2, (4 * hid, hid), jnp.float32, -k, k)
    b_ih = jax.random.uniform(k3, (4 * hid,), jnp.float32, -k, k)
    b_hh = jax.random.uniform(k4, (4 * hid,), jnp.float32, -k, k)
    # (In, 4H) / (H, 4H) / (1, 4H), PyTorch gate order i,f,g,o
    return dict(wih=w_ih.T, whh=w_hh.T, b=(b_ih + b_hh).reshape(1, 4 * hid))


def build_params(key, emb_szs, n_cont, szs, rnn_hidden_sz, rnn_cont_sz,
                 rnn_emb_sz, rnn_n_layers, lin_sz, out_sz):
    keys = iter(jax.random.split(key, 64))
    p = {}
    # StructuredNet
    p["str_embs"] = [_embedding(next(keys), c, s) for c, s in emb_szs]
    n_emb = sum(s for _, s in emb_szs)
    sizes = [n_emb + n_cont] + list(szs)
    str_lins = [_kaiming_linear(next(keys), sizes[i], sizes[i + 1], bn_fold=True)
                for i in range(len(sizes) - 1)]
    # Fold the eval-mode input BN on x_cont (y = x_cont * BN_SCALE) into the
    # rows of the first linear that consume the continuous features.
    w0, b0 = str_lins[0]
    w0 = w0.at[n_emb:, :].multiply(BN_SCALE)
    str_lins[0] = (w0, b0)
    p["str_lins"] = str_lins
    p["str_outp"] = _kaiming_linear(next(keys), sizes[-1], rnn_hidden_sz)
    # RNN embeddings + LSTM
    p["rnn_embs"] = [_embedding(next(keys), c, s) for c, s in rnn_emb_sz]
    n_rnn_emb = sum(s for _, s in rnn_emb_sz)
    rnn_in = rnn_cont_sz + n_rnn_emb
    p["lstm"] = []
    for layer in range(rnn_n_layers):
        in_f = rnn_in if layer == 0 else rnn_hidden_sz
        p["lstm"].append(_lstm_layer(next(keys), in_f, rnn_hidden_sz))
    # heads: lin (ReLU + BN folded) split into metadata-rows / rnn-rows; out plain
    lin_w, lin_b = _kaiming_linear(next(keys), rnn_hidden_sz * 2, lin_sz, bn_fold=True)
    p["lin_wm"] = lin_w[:rnn_hidden_sz, :]
    p["lin_wr"] = lin_w[rnn_hidden_sz:, :]
    p["lin_b"] = lin_b
    p["out"] = _kaiming_linear(next(keys), lin_sz, out_sz)
    return p


# ------------------------------- forward pass ------------------------------ #

def multimodal_forward(p, cats, conts, cat_seqs, cont_seqs, hidden, *, rnn_n_layers):
    B = cats.shape[0]
    T = cat_seqs.shape[1]
    B_pad = -(-B // 8) * 8                                # pad batch to sublane multiple
    if B_pad != B:
        pad = B_pad - B
        cats = jnp.pad(cats, ((0, pad), (0, 0)))
        conts = jnp.pad(conts, ((0, pad), (0, 0)))
        cat_seqs = jnp.pad(cat_seqs, ((0, pad), (0, 0), (0, 0)))
        cont_seqs = jnp.pad(cont_seqs, ((0, pad), (0, 0), (0, 0)))
        hidden = jnp.pad(hidden, ((0, 0), (0, pad), (0, 0)))

    # embedding gathers / concats (plain-JAX glue); emb_drop identity in eval
    x_emb = [jnp.take(tbl, cats[:, i], axis=0) for i, tbl in enumerate(p["str_embs"])]
    x_struct = jnp.concatenate(x_emb + [conts], axis=1)                # (Bp, n_emb+n_cont)

    emb_seqs = [jnp.take(tbl, cat_seqs[:, :, i], axis=0)
                for i, tbl in enumerate(p["rnn_embs"])]                # (Bp, T, d_i)
    seqs = jnp.concatenate([cont_seqs] + emb_seqs, axis=2)             # (Bp, T, In)
    # time-major flatten in the wrapper so every in-kernel per-step slice is a
    # contiguous, sublane-aligned leading-dim slab (no in-kernel relayout)
    seq_flat = jnp.transpose(seqs, (1, 0, 2)).reshape(T * B_pad, seqs.shape[-1])

    args = [x_struct, seq_flat, hidden]
    for (w, b) in p["str_lins"]:
        args += [w, b]
    args += [p["str_outp"][0], p["str_outp"][1]]
    for lp in p["lstm"]:
        args += [lp["wih"], lp["whh"], lp["b"]]
    args += [p["lin_wm"], p["lin_wr"], p["lin_b"], p["out"][0], p["out"][1]]

    out_sz = p["out"][0].shape[1]
    H = p["str_outp"][0].shape[1]
    kernel = _make_fused_kernel(len(p["str_lins"]), rnn_n_layers, T, H)
    out = pl.pallas_call(
        kernel,
        out_shape=jax.ShapeDtypeStruct((B_pad, out_sz), jnp.float32),
        in_specs=[_VMEM] * len(args),
        out_specs=_VMEM,
    )(*args)
    return out[:B]


# ----------------------------------- main ----------------------------------- #

if __name__ == "__main__":
    # Small, forward-consistent config
    B, T = 4, 6
    emb_szs = [(10, 3), (8, 4)]          # structured categorical embeddings
    n_cont = 5
    szs = [16, 8]
    rnn_hidden_sz = 16
    rnn_cont_sz = 3
    rnn_emb_sz = [(12, 4), (6, 2)]       # sequence categorical embeddings
    rnn_n_layers = 2
    lin_sz = 10
    out_sz = 1

    root = jax.random.PRNGKey(0)
    kp, k1, k2, k3, k4 = jax.random.split(root, 5)

    params = build_params(kp, emb_szs, n_cont, szs, rnn_hidden_sz, rnn_cont_sz,
                          rnn_emb_sz, rnn_n_layers, lin_sz, out_sz)

    cats = jnp.stack([jax.random.randint(jax.random.fold_in(k1, i), (B,), 0, c)
                      for i, (c, _) in enumerate(emb_szs)], axis=1)          # (B, 2) int32
    conts = jax.random.normal(k2, (B, n_cont), jnp.float32)                  # (B, 5)
    cat_seqs = jnp.stack([jax.random.randint(jax.random.fold_in(k3, i), (B, T), 0, c)
                          for i, (c, _) in enumerate(rnn_emb_sz)], axis=2)   # (B, T, 2)
    cont_seqs = jax.random.normal(k4, (B, T, rnn_cont_sz), jnp.float32)      # (B, T, 3)
    hidden = jnp.zeros((rnn_n_layers, B, rnn_hidden_sz), jnp.float32)        # init_hidden

    fwd = jax.jit(functools.partial(multimodal_forward, rnn_n_layers=rnn_n_layers))
    out = fwd(params, cats, conts, cat_seqs, cont_seqs, hidden)
    jax.block_until_ready(out)
    assert out.shape == (B, out_sz), out.shape
    print("KERNEL_OK")
</pallas_src>

<mosaic_0001>
module attributes {stable_mosaic.version = 11 : i64} {
  func.func @kernel(%arg0: memref<8x12xf32, #tpu.memory_space<vmem>>, %arg1: memref<48x9xf32, #tpu.memory_space<vmem>>, %arg2: memref<2x8x16xf32, #tpu.memory_space<vmem>>, %arg3: memref<12x16xf32, #tpu.memory_space<vmem>>, %arg4: memref<1x16xf32, #tpu.memory_space<vmem>>, %arg5: memref<16x8xf32, #tpu.memory_space<vmem>>, %arg6: memref<1x8xf32, #tpu.memory_space<vmem>>, %arg7: memref<8x16xf32, #tpu.memory_space<vmem>>, %arg8: memref<1x16xf32, #tpu.memory_space<vmem>>, %arg9: memref<9x64xf32, #tpu.memory_space<vmem>>, %arg10: memref<16x64xf32, #tpu.memory_space<vmem>>, %arg11: memref<1x64xf32, #tpu.memory_space<vmem>>, %arg12: memref<16x64xf32, #tpu.memory_space<vmem>>, %arg13: memref<16x64xf32, #tpu.memory_space<vmem>>, %arg14: memref<1x64xf32, #tpu.memory_space<vmem>>, %arg15: memref<16x10xf32, #tpu.memory_space<vmem>>, %arg16: memref<16x10xf32, #tpu.memory_space<vmem>>, %arg17: memref<1x10xf32, #tpu.memory_space<vmem>>, %arg18: memref<10x1xf32, #tpu.memory_space<vmem>>, %arg19: memref<1x1xf32, #tpu.memory_space<vmem>>, %arg20: memref<8x1xf32, #tpu.memory_space<vmem>>) attributes {dimension_semantics = [], scalar_prefetch = 0 : i64, scratch_operands = 0 : i64, tpu.core_type = #tpu.core_type<tc>} {
    %c0 = arith.constant 0 : index
    %c0_0 = arith.constant 0 : index
    %0 = vector.load %arg0[%c0, %c0_0] : memref<8x12xf32, #tpu.memory_space<vmem>>, vector<8x12xf32>
    %c0_1 = arith.constant 0 : index
    %c0_2 = arith.constant 0 : index
    %1 = vector.load %arg3[%c0_1, %c0_2] : memref<12x16xf32, #tpu.memory_space<vmem>>, vector<12x16xf32>
    %c0_3 = arith.constant 0 : index
    %c0_4 = arith.constant 0 : index
    %2 = vector.load %arg4[%c0_3, %c0_4] : memref<1x16xf32, #tpu.memory_space<vmem>>, vector<1x16xf32>
    %cst = arith.constant dense<0.000000e+00> : vector<8x16xf32>
    %3 = tpu.matmul %0, %1, %cst {dimension_numbers = #tpu.dot_dimension_numbers<[1], [0], [0], [1], [0, 0, 1, 1], [], []>} : vector<8x12xf32>, vector<12x16xf32>, vector<8x16xf32> -> vector<8x16xf32>
    %4 = vector.broadcast %2 : vector<1x16xf32> to vector<8x16xf32>
    %5 = arith.addf %3, %4 : vector<8x16xf32>
    %cst_5 = arith.constant 0.000000e+00 : f32
    %6 = vector.broadcast %cst_5 : f32 to vector<8x16xf32>
    %7 = arith.maximumf %5, %6 : vector<8x16xf32>
    %c0_6 = arith.constant 0 : index
    %c0_7 = arith.constant 0 : index
    %8 = vector.load %arg5[%c0_6, %c0_7] : memref<16x8xf32, #tpu.memory_space<vmem>>, vector<16x8xf32>
    %c0_8 = arith.constant 0 : index
    %c0_9 = arith.constant 0 : index
    %9 = vector.load %arg6[%c0_8, %c0_9] : memref<1x8xf32, #tpu.memory_space<vmem>>, vector<1x8xf32>
    %cst_10 = arith.constant dense<0.000000e+00> : vector<8x8xf32>
    %10 = tpu.matmul %7, %8, %cst_10 {dimension_numbers = #tpu.dot_dimension_numbers<[1], [0], [0], [1], [0, 0, 1, 1], [], []>} : vector<8x16xf32>, vector<16x8xf32>, vector<8x8xf32> -> vector<8x8xf32>
    %11 = vector.broadcast %9 : vector<1x8xf32> to vector<8x8xf32>
    %12 = arith.addf %10, %11 : vector<8x8xf32>
    %cst_11 = arith.constant 0.000000e+00 : f32
    %13 = vector.broadcast %cst_11 : f32 to vector<8x8xf32>
    %14 = arith.maximumf %12, %13 : vector<8x8xf32>
    %c0_12 = arith.constant 0 : index
    %c0_13 = arith.constant 0 : index
    %15 = vector.load %arg7[%c0_12, %c0_13] : memref<8x16xf32, #tpu.memory_space<vmem>>, vector<8x16xf32>
    %c0_14 = arith.constant 0 : index
    %c0_15 = arith.constant 0 : index
    %16 = vector.load %arg8[%c0_14, %c0_15] : memref<1x16xf32, #tpu.memory_space<vmem>>, vector<1x16xf32>
    %cst_16 = arith.constant dense<0.000000e+00> : vector<8x16xf32>
    %17 = tpu.matmul %14, %15, %cst_16 {dimension_numbers = #tpu.dot_dimension_numbers<[1], [0], [0], [1], [0, 0, 1, 1], [], []>} : vector<8x8xf32>, vector<8x16xf32>, vector<8x16xf32> -> vector<8x16xf32>
    %18 = vector.broadcast %16 : vector<1x16xf32> to vector<8x16xf32>
    %19 = arith.addf %17, %18 : vector<8x16xf32>
    %c0_17 = arith.constant 0 : index
    %c0_18 = arith.constant 0 : index
    %20 = vector.load %arg1[%c0_17, %c0_18] : memref<48x9xf32, #tpu.memory_space<vmem>>, vector<48x9xf32>
    %c0_19 = arith.constant 0 : index
    %c0_20 = arith.constant 0 : index
    %21 = vector.load %arg9[%c0_19, %c0_20] : memref<9x64xf32, #tpu.memory_space<vmem>>, vector<9x64xf32>
    %c0_21 = arith.constant 0 : index
    %c0_22 = arith.constant 0 : index
    %22 = vector.load %arg10[%c0_21, %c0_22] : memref<16x64xf32, #tpu.memory_space<vmem>>, vector<16x64xf32>
    %c0_23 = arith.constant 0 : index
    %c0_24 = arith.constant 0 : index
    %23 = vector.load %arg11[%c0_23, %c0_24] : memref<1x64xf32, #tpu.memory_space<vmem>>, vector<1x64xf32>
    %cst_25 = arith.constant dense<0.000000e+00> : vector<48x64xf32>
    %24 = tpu.matmul %20, %21, %cst_25 {dimension_numbers = #tpu.dot_dimension_numbers<[1], [0], [0], [1], [0, 0, 1, 1], [], []>} : vector<48x9xf32>, vector<9x64xf32>, vector<48x64xf32> -> vector<48x64xf32>
    %25 = vector.broadcast %23 : vector<1x64xf32> to vector<48x64xf32>
    %26 = arith.addf %24, %25 : vector<48x64xf32>
    %c0_26 = arith.constant 0 : index
    %c0_27 = arith.constant 0 : index
    %c0_28 = arith.constant 0 : index
    %27 = vector.load %arg2[%c0_26, %c0_27, %c0_28] : memref<2x8x16xf32, #tpu.memory_space<vmem>>, vector<1x8x16xf32>
    %28 = vector.shape_cast %27 : vector<1x8x16xf32> to vector<8x16xf32>
    %29 = vector.extract_strided_slice %26 {offsets = [0, 0], sizes = [8, 64], strides = [1, 1]} : vector<48x64xf32> to vector<8x64xf32>
    %cst_29 = arith.constant dense<0.000000e+00> : vector<8x64xf32>
    %30 = tpu.matmul %28, %22, %cst_29 {dimension_numbers = #tpu.dot_dimension_numbers<[1], [0], [0], [1], [0, 0, 1, 1], [], []>} : vector<8x16xf32>, vector<16x64xf32>, vector<8x64xf32> -> vector<8x64xf32>
    %31 = arith.addf %29, %30 : vector<8x64xf32>
    %32 = arith.negf %31 : vector<8x64xf32>
    %33 = math.exp %32 : vector<8x64xf32>
    %cst_30 = arith.constant 1.000000e+00 : f32
    %34 = vector.broadcast %cst_30 : f32 to vector<8x64xf32>
    %35 = arith.addf %34, %33 : vector<8x64xf32>
    %36 = arith.divf %34, %35 : vector<8x64xf32>
    %37 = math.tanh %31 : vector<8x64xf32>
    %38 = vector.extract_strided_slice %36 {offsets = [0, 0], sizes = [8, 16], strides = [1, 1]} : vector<8x64xf32> to vector<8x16xf32>
    %39 = vector.extract_strided_slice %36 {offsets = [0, 16], sizes = [8, 16], strides = [1, 1]} : vector<8x64xf32> to vector<8x16xf32>
    %40 = vector.extract_strided_slice %37 {offsets = [0, 32], sizes = [8, 16], strides = [1, 1]} : vector<8x64xf32> to vector<8x16xf32>
    %41 = vector.extract_strided_slice %36 {offsets = [0, 48], sizes = [8, 16], strides = [1, 1]} : vector<8x64xf32> to vector<8x16xf32>
    %42 = arith.mulf %39, %19 : vector<8x16xf32>
    %43 = arith.mulf %38, %40 : vector<8x16xf32>
    %44 = arith.addf %42, %43 : vector<8x16xf32>
    %45 = math.tanh %44 : vector<8x16xf32>
    %46 = arith.mulf %41, %45 : vector<8x16xf32>
    %47 = vector.extract_strided_slice %26 {offsets = [8, 0], sizes = [8, 64], strides = [1, 1]} : vector<48x64xf32> to vector<8x64xf32>
    %cst_31 = arith.constant dense<0.000000e+00> : vector<8x64xf32>
    %48 = tpu.matmul %46, %22, %cst_31 {dimension_numbers = #tpu.dot_dimension_numbers<[1], [0], [0], [1], [0, 0, 1, 1], [], []>} : vector<8x16xf32>, vector<16x64xf32>, vector<8x64xf32> -> vector<8x64xf32>
    %49 = arith.addf %47, %48 : vector<8x64xf32>
    %50 = arith.negf %49 : vector<8x64xf32>
    %51 = math.exp %50 : vector<8x64xf32>
    %cst_32 = arith.constant 1.000000e+00 : f32
    %52 = vector.broadcast %cst_32 : f32 to vector<8x64xf32>
    %53 = arith.addf %52, %51 : vector<8x64xf32>
    %54 = arith.divf %52, %53 : vector<8x64xf32>
    %55 = math.tanh %49 : vector<8x64xf32>
    %56 = vector.extract_strided_slice %54 {offsets = [0, 0], sizes = [8, 16], strides = [1, 1]} : vector<8x64xf32> to vector<8x16xf32>
    %57 = vector.extract_strided_slice %54 {offsets = [0, 16], sizes = [8, 16], strides = [1, 1]} : vector<8x64xf32> to vector<8x16xf32>
    %58 = vector.extract_strided_slice %55 {offsets = [0, 32], sizes = [8, 16], strides = [1, 1]} : vector<8x64xf32> to vector<8x16xf32>
    %59 = vector.extract_strided_slice %54 {offsets = [0, 48], sizes = [8, 16], strides = [1, 1]} : vector<8x64xf32> to vector<8x16xf32>
    %60 = arith.mulf %57, %44 : vector<8x16xf32>
    %61 = arith.mulf %56, %58 : vector<8x16xf32>
    %62 = arith.addf %60, %61 : vector<8x16xf32>
    %63 = math.tanh %62 : vector<8x16xf32>
    %64 = arith.mulf %59, %63 : vector<8x16xf32>
    %65 = vector.extract_strided_slice %26 {offsets = [16, 0], sizes = [8, 64], strides = [1, 1]} : vector<48x64xf32> to vector<8x64xf32>
    %cst_33 = arith.constant dense<0.000000e+00> : vector<8x64xf32>
    %66 = tpu.matmul %64, %22, %cst_33 {dimension_numbers = #tpu.dot_dimension_numbers<[1], [0], [0], [1], [0, 0, 1, 1], [], []>} : vector<8x16xf32>, vector<16x64xf32>, vector<8x64xf32> -> vector<8x64xf32>
    %67 = arith.addf %65, %66 : vector<8x64xf32>
    %68 = arith.negf %67 : vector<8x64xf32>
    %69 = math.exp %68 : vector<8x64xf32>
    %cst_34 = arith.constant 1.000000e+00 : f32
    %70 = vector.broadcast %cst_34 : f32 to vector<8x64xf32>
    %71 = arith.addf %70, %69 : vector<8x64xf32>
    %72 = arith.divf %70, %71 : vector<8x64xf32>
    %73 = math.tanh %67 : vector<8x64xf32>
    %74 = vector.extract_strided_slice %72 {offsets = [0, 0], sizes = [8, 16], strides = [1, 1]} : vector<8x64xf32> to vector<8x16xf32>
    %75 = vector.extract_strided_slice %72 {offsets = [0, 16], sizes = [8, 16], strides = [1, 1]} : vector<8x64xf32> to vector<8x16xf32>
    %76 = vector.extract_strided_slice %73 {offsets = [0, 32], sizes = [8, 16], strides = [1, 1]} : vector<8x64xf32> to vector<8x16xf32>
    %77 = vector.extract_strided_slice %72 {offsets = [0, 48], sizes = [8, 16], strides = [1, 1]} : vector<8x64xf32> to vector<8x16xf32>
    %78 = arith.mulf %75, %62 : vector<8x16xf32>
    %79 = arith.mulf %74, %76 : vector<8x16xf32>
    %80 = arith.addf %78, %79 : vector<8x16xf32>
    %81 = math.tanh %80 : vector<8x16xf32>
    %82 = arith.mulf %77, %81 : vector<8x16xf32>
    %83 = vector.extract_strided_slice %26 {offsets = [24, 0], sizes = [8, 64], strides = [1, 1]} : vector<48x64xf32> to vector<8x64xf32>
    %cst_35 = arith.constant dense<0.000000e+00> : vector<8x64xf32>
    %84 = tpu.matmul %82, %22, %cst_35 {dimension_numbers = #tpu.dot_dimension_numbers<[1], [0], [0], [1], [0, 0, 1, 1], [], []>} : vector<8x16xf32>, vector<16x64xf32>, vector<8x64xf32> -> vector<8x64xf32>
    %85 = arith.addf %83, %84 : vector<8x64xf32>
    %86 = arith.negf %85 : vector<8x64xf32>
    %87 = math.exp %86 : vector<8x64xf32>
    %cst_36 = arith.constant 1.000000e+00 : f32
    %88 = vector.broadcast %cst_36 : f32 to vector<8x64xf32>
    %89 = arith.addf %88, %87 : vector<8x64xf32>
    %90 = arith.divf %88, %89 : vector<8x64xf32>
    %91 = math.tanh %85 : vector<8x64xf32>
    %92 = vector.extract_strided_slice %90 {offsets = [0, 0], sizes = [8, 16], strides = [1, 1]} : vector<8x64xf32> to vector<8x16xf32>
    %93 = vector.extract_strided_slice %90 {offsets = [0, 16], sizes = [8, 16], strides = [1, 1]} : vector<8x64xf32> to vector<8x16xf32>
    %94 = vector.extract_strided_slice %91 {offsets = [0, 32], sizes = [8, 16], strides = [1, 1]} : vector<8x64xf32> to vector<8x16xf32>
    %95 = vector.extract_strided_slice %90 {offsets = [0, 48], sizes = [8, 16], strides = [1, 1]} : vector<8x64xf32> to vector<8x16xf32>
    %96 = arith.mulf %93, %80 : vector<8x16xf32>
    %97 = arith.mulf %92, %94 : vector<8x16xf32>
    %98 = arith.addf %96, %97 : vector<8x16xf32>
    %99 = math.tanh %98 : vector<8x16xf32>
    %100 = arith.mulf %95, %99 : vector<8x16xf32>
    %101 = vector.extract_strided_slice %26 {offsets = [32, 0], sizes = [8, 64], strides = [1, 1]} : vector<48x64xf32> to vector<8x64xf32>
    %cst_37 = arith.constant dense<0.000000e+00> : vector<8x64xf32>
    %102 = tpu.matmul %100, %22, %cst_37 {dimension_numbers = #tpu.dot_dimension_numbers<[1], [0], [0], [1], [0, 0, 1, 1], [], []>} : vector<8x16xf32>, vector<16x64xf32>, vector<8x64xf32> -> vector<8x64xf32>
    %103 = arith.addf %101, %102 : vector<8x64xf32>
    %104 = arith.negf %103 : vector<8x64xf32>
    %105 = math.exp %104 : vector<8x64xf32>
    %cst_38 = arith.constant 1.000000e+00 : f32
    %106 = vector.broadcast %cst_38 : f32 to vector<8x64xf32>
    %107 = arith.addf %106, %105 : vector<8x64xf32>
    %108 = arith.divf %106, %107 : vector<8x64xf32>
    %109 = math.tanh %103 : vector<8x64xf32>
    %110 = vector.extract_strided_slice %108 {offsets = [0, 0], sizes = [8, 16], strides = [1, 1]} : vector<8x64xf32> to vector<8x16xf32>
    %111 = vector.extract_strided_slice %108 {offsets = [0, 16], sizes = [8, 16], strides = [1, 1]} : vector<8x64xf32> to vector<8x16xf32>
    %112 = vector.extract_strided_slice %109 {offsets = [0, 32], sizes = [8, 16], strides = [1, 1]} : vector<8x64xf32> to vector<8x16xf32>
    %113 = vector.extract_strided_slice %108 {offsets = [0, 48], sizes = [8, 16], strides = [1, 1]} : vector<8x64xf32> to vector<8x16xf32>
    %114 = arith.mulf %111, %98 : vector<8x16xf32>
    %115 = arith.mulf %110, %112 : vector<8x16xf32>
    %116 = arith.addf %114, %115 : vector<8x16xf32>
    %117 = math.tanh %116 : vector<8x16xf32>
    %118 = arith.mulf %113, %117 : vector<8x16xf32>
    %119 = vector.extract_strided_slice %26 {offsets = [40, 0], sizes = [8, 64], strides = [1, 1]} : vector<48x64xf32> to vector<8x64xf32>
    %cst_39 = arith.constant dense<0.000000e+00> : vector<8x64xf32>
    %120 = tpu.matmul %118, %22, %cst_39 {dimension_numbers = #tpu.dot_dimension_numbers<[1], [0], [0], [1], [0, 0, 1, 1], [], []>} : vector<8x16xf32>, vector<16x64xf32>, vector<8x64xf32> -> vector<8x64xf32>
    %121 = arith.addf %119, %120 : vector<8x64xf32>
    %122 = arith.negf %121 : vector<8x64xf32>
    %123 = math.exp %122 : vector<8x64xf32>
    %cst_40 = arith.constant 1.000000e+00 : f32
    %124 = vector.broadcast %cst_40 : f32 to vector<8x64xf32>
    %125 = arith.addf %124, %123 : vector<8x64xf32>
    %126 = arith.divf %124, %125 : vector<8x64xf32>
    %127 = math.tanh %121 : vector<8x64xf32>
    %128 = vector.extract_strided_slice %126 {offsets = [0, 0], sizes = [8, 16], strides = [1, 1]} : vector<8x64xf32> to vector<8x16xf32>
    %129 = vector.extract_strided_slice %126 {offsets = [0, 16], sizes = [8, 16], strides = [1, 1]} : vector<8x64xf32> to vector<8x16xf32>
    %130 = vector.extract_strided_slice %127 {offsets = [0, 32], sizes = [8, 16], strides = [1, 1]} : vector<8x64xf32> to vector<8x16xf32>
    %131 = vector.extract_strided_slice %126 {offsets = [0, 48], sizes = [8, 16], strides = [1, 1]} : vector<8x64xf32> to vector<8x16xf32>
    %132 = arith.mulf %129, %116 : vector<8x16xf32>
    %133 = arith.mulf %128, %130 : vector<8x16xf32>
    %134 = arith.addf %132, %133 : vector<8x16xf32>
    %135 = math.tanh %134 : vector<8x16xf32>
    %136 = arith.mulf %131, %135 : vector<8x16xf32>
    %137 = tpu.concatenate %46, %64, %82, %100, %118, %136 in 0 : vector<8x16xf32>, vector<8x16xf32>, vector<8x16xf32>, vector<8x16xf32>, vector<8x16xf32>, vector<8x16xf32> -> vector<48x16xf32>
    %c0_41 = arith.constant 0 : index
    %c0_42 = arith.constant 0 : index
    %138 = vector.load %arg12[%c0_41, %c0_42] : memref<16x64xf32, #tpu.memory_space<vmem>>, vector<16x64xf32>
    %c0_43 = arith.constant 0 : index
    %c0_44 = arith.constant 0 : index
    %139 = vector.load %arg13[%c0_43, %c0_44] : memref<16x64xf32, #tpu.memory_space<vmem>>, vector<16x64xf32>
    %c0_45 = arith.constant 0 : index
    %c0_46 = arith.constant 0 : index
    %140 = vector.load %arg14[%c0_45, %c0_46] : memref<1x64xf32, #tpu.memory_space<vmem>>, vector<1x64xf32>
    %cst_47 = arith.constant dense<0.000000e+00> : vector<48x64xf32>
    %141 = tpu.matmul %137, %138, %cst_47 {dimension_numbers = #tpu.dot_dimension_numbers<[1], [0], [0], [1], [0, 0, 1, 1], [], []>} : vector<48x16xf32>, vector<16x64xf32>, vector<48x64xf32> -> vector<48x64xf32>
    %142 = vector.broadcast %140 : vector<1x64xf32> to vector<48x64xf32>
    %143 = arith.addf %141, %142 : vector<48x64xf32>
    %c1 = arith.constant 1 : index
    %c0_48 = arith.constant 0 : index
    %c0_49 = arith.constant 0 : index
    %144 = vector.load %arg2[%c1, %c0_48, %c0_49] : memref<2x8x16xf32, #tpu.memory_space<vmem>>, vector<1x8x16xf32>
    %145 = vector.shape_cast %144 : vector<1x8x16xf32> to vector<8x16xf32>
    %146 = vector.extract_strided_slice %143 {offsets = [0, 0], sizes = [8, 64], strides = [1, 1]} : vector<48x64xf32> to vector<8x64xf32>
    %cst_50 = arith.constant dense<0.000000e+00> : vector<8x64xf32>
    %147 = tpu.matmul %145, %139, %cst_50 {dimension_numbers = #tpu.dot_dimension_numbers<[1], [0], [0], [1], [0, 0, 1, 1], [], []>} : vector<8x16xf32>, vector<16x64xf32>, vector<8x64xf32> -> vector<8x64xf32>
    %148 = arith.addf %146, %147 : vector<8x64xf32>
    %149 = arith.negf %148 : vector<8x64xf32>
    %150 = math.exp %149 : vector<8x64xf32>
    %cst_51 = arith.constant 1.000000e+00 : f32
    %151 = vector.broadcast %cst_51 : f32 to vector<8x64xf32>
    %152 = arith.addf %151, %150 : vector<8x64xf32>
    %153 = arith.divf %151, %152 : vector<8x64xf32>
    %154 = math.tanh %148 : vector<8x64xf32>
    %155 = vector.extract_strided_slice %153 {offsets = [0, 0], sizes = [8, 16], strides = [1, 1]} : vector<8x64xf32> to vector<8x16xf32>
    %156 = vector.extract_strided_slice %153 {offsets = [0, 16], sizes = [8, 16], strides = [1, 1]} : vector<8x64xf32> to vector<8x16xf32>
    %157 = vector.extract_strided_slice %154 {offsets = [0, 32], sizes = [8, 16], strides = [1, 1]} : vector<8x64xf32> to vector<8x16xf32>
    %158 = vector.extract_strided_slice %153 {offsets = [0, 48], sizes = [8, 16], strides = [1, 1]} : vector<8x64xf32> to vector<8x16xf32>
    %159 = arith.mulf %156, %19 : vector<8x16xf32>
    %160 = arith.mulf %155, %157 : vector<8x16xf32>
    %161 = arith.addf %159, %160 : vector<8x16xf32>
    %162 = math.tanh %161 : vector<8x16xf32>
    %163 = arith.mulf %158, %162 : vector<8x16xf32>
    %164 = vector.extract_strided_slice %143 {offsets = [8, 0], sizes = [8, 64], strides = [1, 1]} : vector<48x64xf32> to vector<8x64xf32>
    %cst_52 = arith.constant dense<0.000000e+00> : vector<8x64xf32>
    %165 = tpu.matmul %163, %139, %cst_52 {dimension_numbers = #tpu.dot_dimension_numbers<[1], [0], [0], [1], [0, 0, 1, 1], [], []>} : vector<8x16xf32>, vector<16x64xf32>, vector<8x64xf32> -> vector<8x64xf32>
    %166 = arith.addf %164, %165 : vector<8x64xf32>
    %167 = arith.negf %166 : vector<8x64xf32>
    %168 = math.exp %167 : vector<8x64xf32>
    %cst_53 = arith.constant 1.000000e+00 : f32
    %169 = vector.broadcast %cst_53 : f32 to vector<8x64xf32>
    %170 = arith.addf %169, %168 : vector<8x64xf32>
    %171 = arith.divf %169, %170 : vector<8x64xf32>
    %172 = math.tanh %166 : vector<8x64xf32>
    %173 = vector.extract_strided_slice %171 {offsets = [0, 0], sizes = [8, 16], strides = [1, 1]} : vector<8x64xf32> to vector<8x16xf32>
    %174 = vector.extract_strided_slice %171 {offsets = [0, 16], sizes = [8, 16], strides = [1, 1]} : vector<8x64xf32> to vector<8x16xf32>
    %175 = vector.extract_strided_slice %172 {offsets = [0, 32], sizes = [8, 16], strides = [1, 1]} : vector<8x64xf32> to vector<8x16xf32>
    %176 = vector.extract_strided_slice %171 {offsets = [0, 48], sizes = [8, 16], strides = [1, 1]} : vector<8x64xf32> to vector<8x16xf32>
    %177 = arith.mulf %174, %161 : vector<8x16xf32>
    %178 = arith.mulf %173, %175 : vector<8x16xf32>
    %179 = arith.addf %177, %178 : vector<8x16xf32>
    %180 = math.tanh %179 : vector<8x16xf32>
    %181 = arith.mulf %176, %180 : vector<8x16xf32>
    %182 = vector.extract_strided_slice %143 {offsets = [16, 0], sizes = [8, 64], strides = [1, 1]} : vector<48x64xf32> to vector<8x64xf32>
    %cst_54 = arith.constant dense<0.000000e+00> : vector<8x64xf32>
    %183 = tpu.matmul %181, %139, %cst_54 {dimension_numbers = #tpu.dot_dimension_numbers<[1], [0], [0], [1], [0, 0, 1, 1], [], []>} : vector<8x16xf32>, vector<16x64xf32>, vector<8x64xf32> -> vector<8x64xf32>
    %184 = arith.addf %182, %183 : vector<8x64xf32>
    %185 = arith.negf %184 : vector<8x64xf32>
    %186 = math.exp %185 : vector<8x64xf32>
    %cst_55 = arith.constant 1.000000e+00 : f32
    %187 = vector.broadcast %cst_55 : f32 to vector<8x64xf32>
    %188 = arith.addf %187, %186 : vector<8x64xf32>
    %189 = arith.divf %187, %188 : vector<8x64xf32>
    %190 = math.tanh %184 : vector<8x64xf32>
    %191 = vector.extract_strided_slice %189 {offsets = [0, 0], sizes = [8, 16], strides = [1, 1]} : vector<8x64xf32> to vector<8x16xf32>
    %192 = vector.extract_strided_slice %189 {offsets = [0, 16], sizes = [8, 16], strides = [1, 1]} : vector<8x64xf32> to vector<8x16xf32>
    %193 = vector.extract_strided_slice %190 {offsets = [0, 32], sizes = [8, 16], strides = [1, 1]} : vector<8x64xf32> to vector<8x16xf32>
    %194 = vector.extract_strided_slice %189 {offsets = [0, 48], sizes = [8, 16], strides = [1, 1]} : vector<8x64xf32> to vector<8x16xf32>
    %195 = arith.mulf %192, %179 : vector<8x16xf32>
    %196 = arith.mulf %191, %193 : vector<8x16xf32>
    %197 = arith.addf %195, %196 : vector<8x16xf32>
    %198 = math.tanh %197 : vector<8x16xf32>
    %199 = arith.mulf %194, %198 : vector<8x16xf32>
    %200 = vector.extract_strided_slice %143 {offsets = [24, 0], sizes = [8, 64], strides = [1, 1]} : vector<48x64xf32> to vector<8x64xf32>
    %cst_56 = arith.constant dense<0.000000e+00> : vector<8x64xf32>
    %201 = tpu.matmul %199, %139, %cst_56 {dimension_numbers = #tpu.dot_dimension_numbers<[1], [0], [0], [1], [0, 0, 1, 1], [], []>} : vector<8x16xf32>, vector<16x64xf32>, vector<8x64xf32> -> vector<8x64xf32>
    %202 = arith.addf %200, %201 : vector<8x64xf32>
    %203 = arith.negf %202 : vector<8x64xf32>
    %204 = math.exp %203 : vector<8x64xf32>
    %cst_57 = arith.constant 1.000000e+00 : f32
    %205 = vector.broadcast %cst_57 : f32 to vector<8x64xf32>
    %206 = arith.addf %205, %204 : vector<8x64xf32>
    %207 = arith.divf %205, %206 : vector<8x64xf32>
    %208 = math.tanh %202 : vector<8x64xf32>
    %209 = vector.extract_strided_slice %207 {offsets = [0, 0], sizes = [8, 16], strides = [1, 1]} : vector<8x64xf32> to vector<8x16xf32>
    %210 = vector.extract_strided_slice %207 {offsets = [0, 16], sizes = [8, 16], strides = [1, 1]} : vector<8x64xf32> to vector<8x16xf32>
    %211 = vector.extract_strided_slice %208 {offsets = [0, 32], sizes = [8, 16], strides = [1, 1]} : vector<8x64xf32> to vector<8x16xf32>
    %212 = vector.extract_strided_slice %207 {offsets = [0, 48], sizes = [8, 16], strides = [1, 1]} : vector<8x64xf32> to vector<8x16xf32>
    %213 = arith.mulf %210, %197 : vector<8x16xf32>
    %214 = arith.mulf %209, %211 : vector<8x16xf32>
    %215 = arith.addf %213, %214 : vector<8x16xf32>
    %216 = math.tanh %215 : vector<8x16xf32>
    %217 = arith.mulf %212, %216 : vector<8x16xf32>
    %218 = vector.extract_strided_slice %143 {offsets = [32, 0], sizes = [8, 64], strides = [1, 1]} : vector<48x64xf32> to vector<8x64xf32>
    %cst_58 = arith.constant dense<0.000000e+00> : vector<8x64xf32>
    %219 = tpu.matmul %217, %139, %cst_58 {dimension_numbers = #tpu.dot_dimension_numbers<[1], [0], [0], [1], [0, 0, 1, 1], [], []>} : vector<8x16xf32>, vector<16x64xf32>, vector<8x64xf32> -> vector<8x64xf32>
    %220 = arith.addf %218, %219 : vector<8x64xf32>
    %221 = arith.negf %220 : vector<8x64xf32>
    %222 = math.exp %221 : vector<8x64xf32>
    %cst_59 = arith.constant 1.000000e+00 : f32
    %223 = vector.broadcast %cst_59 : f32 to vector<8x64xf32>
    %224 = arith.addf %223, %222 : vector<8x64xf32>
    %225 = arith.divf %223, %224 : vector<8x64xf32>
    %226 = math.tanh %220 : vector<8x64xf32>
    %227 = vector.extract_strided_slice %225 {offsets = [0, 0], sizes = [8, 16], strides = [1, 1]} : vector<8x64xf32> to vector<8x16xf32>
    %228 = vector.extract_strided_slice %225 {offsets = [0, 16], sizes = [8, 16], strides = [1, 1]} : vector<8x64xf32> to vector<8x16xf32>
    %229 = vector.extract_strided_slice %226 {offsets = [0, 32], sizes = [8, 16], strides = [1, 1]} : vector<8x64xf32> to vector<8x16xf32>
    %230 = vector.extract_strided_slice %225 {offsets = [0, 48], sizes = [8, 16], strides = [1, 1]} : vector<8x64xf32> to vector<8x16xf32>
    %231 = arith.mulf %228, %215 : vector<8x16xf32>
    %232 = arith.mulf %227, %229 : vector<8x16xf32>
    %233 = arith.addf %231, %232 : vector<8x16xf32>
    %234 = math.tanh %233 : vector<8x16xf32>
    %235 = arith.mulf %230, %234 : vector<8x16xf32>
    %236 = vector.extract_strided_slice %143 {offsets = [40, 0], sizes = [8, 64], strides = [1, 1]} : vector<48x64xf32> to vector<8x64xf32>
    %cst_60 = arith.constant dense<0.000000e+00> : vector<8x64xf32>
    %237 = tpu.matmul %235, %139, %cst_60 {dimension_numbers = #tpu.dot_dimension_numbers<[1], [0], [0], [1], [0, 0, 1, 1], [], []>} : vector<8x16xf32>, vector<16x64xf32>, vector<8x64xf32> -> vector<8x64xf32>
    %238 = arith.addf %236, %237 : vector<8x64xf32>
    %239 = arith.negf %238 : vector<8x64xf32>
    %240 = math.exp %239 : vector<8x64xf32>
    %cst_61 = arith.constant 1.000000e+00 : f32
    %241 = vector.broadcast %cst_61 : f32 to vector<8x64xf32>
    %242 = arith.addf %241, %240 : vector<8x64xf32>
    %243 = arith.divf %241, %242 : vector<8x64xf32>
    %244 = math.tanh %238 : vector<8x64xf32>
    %245 = vector.extract_strided_slice %243 {offsets = [0, 0], sizes = [8, 16], strides = [1, 1]} : vector<8x64xf32> to vector<8x16xf32>
    %246 = vector.extract_strided_slice %243 {offsets = [0, 16], sizes = [8, 16], strides = [1, 1]} : vector<8x64xf32> to vector<8x16xf32>
    %247 = vector.extract_strided_slice %244 {offsets = [0, 32], sizes = [8, 16], strides = [1, 1]} : vector<8x64xf32> to vector<8x16xf32>
    %248 = vector.extract_strided_slice %243 {offsets = [0, 48], sizes = [8, 16], strides = [1, 1]} : vector<8x64xf32> to vector<8x16xf32>
    %249 = arith.mulf %246, %233 : vector<8x16xf32>
    %250 = arith.mulf %245, %247 : vector<8x16xf32>
    %251 = arith.addf %249, %250 : vector<8x16xf32>
    %252 = math.tanh %251 : vector<8x16xf32>
    %253 = arith.mulf %248, %252 : vector<8x16xf32>
    %c0_62 = arith.constant 0 : index
    %c0_63 = arith.constant 0 : index
    %254 = vector.load %arg15[%c0_62, %c0_63] : memref<16x10xf32, #tpu.memory_space<vmem>>, vector<16x10xf32>
    %cst_64 = arith.constant dense<0.000000e+00> : vector<8x10xf32>
    %255 = tpu.matmul %19, %254, %cst_64 {dimension_numbers = #tpu.dot_dimension_numbers<[1], [0], [0], [1], [0, 0, 1, 1], [], []>} : vector<8x16xf32>, vector<16x10xf32>, vector<8x10xf32> -> vector<8x10xf32>
    %c0_65 = arith.constant 0 : index
    %c0_66 = arith.constant 0 : index
    %256 = vector.load %arg16[%c0_65, %c0_66] : memref<16x10xf32, #tpu.memory_space<vmem>>, vector<16x10xf32>
    %cst_67 = arith.constant dense<0.000000e+00> : vector<8x10xf32>
    %257 = tpu.matmul %253, %256, %cst_67 {dimension_numbers = #tpu.dot_dimension_numbers<[1], [0], [0], [1], [0, 0, 1, 1], [], []>} : vector<8x16xf32>, vector<16x10xf32>, vector<8x10xf32> -> vector<8x10xf32>
    %258 = arith.addf %255, %257 : vector<8x10xf32>
    %c0_68 = arith.constant 0 : index
    %c0_69 = arith.constant 0 : index
    %259 = vector.load %arg17[%c0_68, %c0_69] : memref<1x10xf32, #tpu.memory_space<vmem>>, vector<1x10xf32>
    %260 = vector.broadcast %259 : vector<1x10xf32> to vector<8x10xf32>
    %261 = arith.addf %258, %260 : vector<8x10xf32>
    %cst_70 = arith.constant 0.000000e+00 : f32
    %262 = vector.broadcast %cst_70 : f32 to vector<8x10xf32>
    %263 = arith.maximumf %261, %262 : vector<8x10xf32>
    %c0_71 = arith.constant 0 : index
    %c0_72 = arith.constant 0 : index
    %264 = vector.load %arg18[%c0_71, %c0_72] : memref<10x1xf32, #tpu.memory_space<vmem>>, vector<10x1xf32>
    %cst_73 = arith.constant dense<0.000000e+00> : vector<8x1xf32>
    %265 = tpu.matmul %263, %264, %cst_73 {dimension_numbers = #tpu.dot_dimension_numbers<[1], [0], [0], [1], [0, 0, 1, 1], [], []>} : vector<8x10xf32>, vector<10x1xf32>, vector<8x1xf32> -> vector<8x1xf32>
    %c0_74 = arith.constant 0 : index
    %c0_75 = arith.constant 0 : index
    %266 = vector.load %arg19[%c0_74, %c0_75] : memref<1x1xf32, #tpu.memory_space<vmem>>, vector<1x1xf32>
    %267 = vector.broadcast %266 : vector<1x1xf32> to vector<8x1xf32>
    %268 = arith.addf %265, %267 : vector<8x1xf32>
    %c0_76 = arith.constant 0 : index
    %c0_77 = arith.constant 0 : index
    %269 = vector.load %arg20[%c0_76, %c0_77] : memref<8x1xf32, #tpu.memory_space<vmem>>, vector<8x1xf32>
    tpu.vector_store %arg20[%c0_76, %c0_77], %268 {strides = array<i32>} : memref<8x1xf32, #tpu.memory_space<vmem>>, vector<8x1xf32>,
    return
  }
}

</mosaic_0001>

<bundles_post_ra>
// kernel: multimodal_forward.1
= control target key start
LH: loop header
LB: loop body
LE: loop exit
PB: predicated region body
PF: predicated region fallthrough
CT: control target
= control target key end

     0   :  { %vm81_vm0 = vcmask 1043456   ;;  %v2463_v0 = vmov 0.0|0.0   ;;  %vm2464_vm1 = vmmov 1   ;;  %vm2465_vm3 = vmmov 0   ;;  %s2884_s3 = inlined_call_operand.vmem [shape: f32[12,16], index: 3, kind: input, shape index: {}]   ;;  %s2885_s0 = inlined_call_operand.vmem [shape: f32[8,12], index: 0, kind: input, shape index: {}]   ;;  %s2886_s5 = inlined_call_operand.vmem [shape: f32[16,8], index: 5, kind: input, shape index: {}]   ;;  %s2887_s4 = inlined_call_operand.vmem [shape: f32[1,16], index: 4, kind: input, shape index: {}]   ;;  %s2888_s9 = inlined_call_operand.vmem [shape: f32[9,64], index: 9, kind: input, shape index: {}]   ;;  %s2889_s7 = inlined_call_operand.vmem [shape: f32[8,16], index: 7, kind: input, shape index: {}]   ;;  %s2890_s1 = inlined_call_operand.vmem [shape: f32[48,9], index: 1, kind: input, shape index: {}]   ;;  %s2891_s10 = inlined_call_operand.vmem [shape: f32[16,64], index: 10, kind: input, shape index: {}]   ;;  %s2892_s6 = inlined_call_operand.vmem [shape: f32[1,8], index: 6, kind: input, shape index: {}]   ;;  %s2893_s2 = inlined_call_operand.vmem [shape: f32[2,8,16], index: 2, kind: input, shape index: {}]   ;;  %s2894_s11 = inlined_call_operand.vmem [shape: f32[1,64], index: 11, kind: input, shape index: {}]   ;;  %s2895_s8 = inlined_call_operand.vmem [shape: f32[1,16], index: 8, kind: input, shape index: {}]   ;;  %s2896_s12 = inlined_call_operand.vmem [shape: f32[16,64], index: 12, kind: input, shape index: {}]   ;;  %s2897_s13 = inlined_call_operand.vmem [shape: f32[16,64], index: 13, kind: input, shape index: {}]   ;;  %s2898_s14 = inlined_call_operand.vmem [shape: f32[1,64], index: 14, kind: input, shape index: {}]   ;;  %s2899_s15 = inlined_call_operand.vmem [shape: f32[16,10], index: 15, kind: input, shape index: {}]   ;;  %s2900_s16 = inlined_call_operand.vmem [shape: f32[16,10], index: 16, kind: input, shape index: {}]   ;;  %s2901_s18 = inlined_call_operand.vmem [shape: f32[10,1], index: 18, kind: input, shape index: {}]   ;;  %s2902_s19 = inlined_call_operand.<no memory space> [shape: f32[1,1], index: 19, kind: input, shape index: {}]   ;;  %s2903_s17 = inlined_call_operand.vmem [shape: f32[1,10], index: 17, kind: input, shape index: {}]   ;;  %s2904_s20 = inlined_call_operand.vmem [shape: f32[8,1], index: 20, kind: output, shape index: {}]  }
   0x1   :  { %2908 = sst [smem:[#allocation3_spill]] %s2884_s3  ;;  %2296 = vmatprep.subr.bf16.mxu0 %v2463_v0  ;;  %vm2298_vm2 = vmpackc.low %vm81_vm0, %vm2464_vm1  ;;  %2300 = vmatprep.subr.bf16.mxu1 %v2463_v0  ;;  %v2466_v4 = vmov 0.0   ;;  %vm77_vm4 = vcmask 97280   ;;  %vm165_vm5 = vcmask 130048   ;;  %vm358_vm6 = vcmask 1040384   ;;  %v240_v17 = vld [vmem:[%s2889_s7] sm:$0xff] }
   0x2   :  { %2909 = sst [smem:[#allocation4_spill]] %s2885_s0  ;;  %s2913_s23 = sld [smem:[#allocation3_spill]]  ;;  %2150 = vmatprep.mubr.msk.f32.mxu0 %vm2465_vm3, %v2466_v4  ;;  %2157 = vmatprep.mubr.msk.f32.mxu1 %vm2465_vm3, %v2466_v4  ;;  %vm2304_vm7 = vmpackc.low %vm358_vm6, %vm2464_vm1  ;;  %v322_v18 = vld [vmem:[%s2890_s1] sm:$0xff]  ;;  %vm339_vm8 = vcmask 72704   ;;  %v323_v20 = vld [vmem:[%s2890_s1 + $0x8] sm:$0xff]  ;;  %vm248_vm9 = vcmask 64512  }
   0x3   :  { %2910 = sst [smem:[#allocation5_spill]] %s2886_s5  ;;  %s2914_s26 = sld [smem:[#allocation4_spill]]  ;;  %v330_v19 = vld [vmem:[%s2891_s10] sm:$0xff]  ;;  %v331_v21 = vld [vmem:[%s2891_s10 + $0x8] sm:$0xff]  ;;  %vm1944_vm10 = vcmask 1041408   ;;  %vm1940_vm12 = vcmask 80896  }
   0x4   :  { %2911 = sst [smem:[#allocation6_spill]] %s2887_s4  ;;  %v2631_v22 = vpack.c.bf16 %v331_v21, %v330_v19  ;;  %v2027_v23 = vld [vmem:[%s2892_s6] ss:$0 sm:$0xff]  ;;  %s2467_s4 = smov 96   ;;  %vm2357_vm11 = vmpackc.low %vm1944_vm10, %vm2464_vm1  ;;  %vm2018_vm13 = vcmask 7168  }
   0x5   :  { %2912 = sst [smem:[#allocation7_spill]] %s2888_s9  ;;  %s2915_s9 = sld [smem:[#allocation5_spill]]  ;;  %v457_v28 = vld [vmem:[%s2893_s2] sm:$0xff] }
   0x6   :  { %s2916_s0 = sld [smem:[#allocation6_spill]]  ;;  %s2917_s24 = sld [smem:[#allocation7_spill]]  ;;  %v2653_v31 = vld [vmem:[%s2894_s11] ss:$0 sm:$0xff] }
   0x7   :  { %v2029_v39 = vld [vmem:[%s2895_s8] ss:$0 sm:$0xff]  ;;  %s2468_s11 = smov 16   ;;  %s2469_s8 = smov 32  }
   0x8   :  { %v68_v1 = vld [vmem:[%s2913_s23] sm:$0xff]  ;;  %v69_v2 = vld [vmem:[%s2913_s23 + $0x8] sm:$0xf] }
   0x9   :  { %v2297_v3 = vpack.c.bf16 %v69_v2, %v68_v1  ;;  %v67_v5 = vld [vmem:[%s2914_s26] sm:$0xff]  ;;  %s2470_s26 = smov 80  }
   0xb   :  { %2299 = vmatpush3.bf16.msk.msra.mxu0 %vm2298_vm2, %v2297_v3  ;;  %v156_v6 = vld [vmem:[%s2915_s9] sm:$0xff]  ;;  %v157_v7 = vld [vmem:[%s2915_s9 + $0x8] sm:$0xff] }
   0xc   :  { %2160 = vmatprep.subr.mxu0 %v2466_v4  ;;  %v2301_v8 = vpack.c.bf16 %v157_v7, %v156_v6  ;;  %v2024_v9 = vld [vmem:[%s2916_s0] ss:$0 sm:$0xff]  ;;  %v329_v15 = vld [vmem:[%s2917_s24 + $0x8] sm:$0x1]  ;;  %v324_v7 = vld [vmem:[%s2890_s1 + $0x10] sm:$0xff] }
   0xd   :  { %v328_v14 = vld [vmem:[%s2917_s24] sm:$0xff] }
   0xe   :  { %2151 = vmatmul.mubr.msk.f32.vlgmr.msra.gmra.mrb[0].mxu0 %vm77_vm4, %v67_v5  ;;  %2302 = vmatpush3.bf16.msra.mxu1 %v2301_v8  ;;  %v2303_v16 = vpack.c.bf16 %v329_v15, %v328_v14  ;;  %v325_v8 = vld [vmem:[%s2890_s1 + $0x18] sm:$0xff] }
   0xf   :  { %2162 = vmatprep.mubr.msk.f32.mxu0 %vm2465_vm3, %v2466_v4  ;;  %2161 = vmatpush3.msra.mxu0 %v240_v17 }
  0x10   :  { %2305 = vmatprep.subr.msk.bf16.mxu1 %vm2304_vm7, %v2303_v16  ;;  %2309 = vmatprep.subr.bf16.mxu0 %v2463_v0 }
  0xe1   :  { %v151_v10 = vpop.f32.mrb[0].mxu0 }
  0xe2   :  { %v152_v11 = vadd.f32 %v2024_v9, %v151_v10  ;;  %v2152_v12 = vpop.f32.mrb[1].mxu0 }
  0xe4   :  { %v155_v13 = vmax.f32 %v152_v11, 0.0 }
  0xe6   :  { %2158 = vmatmul.mubr.msk.f32.vlgmr.msra.gmra.mrb[0].mxu1 %vm165_vm5, %v155_v13 }
  0xe7   :  { %2308 = vmatpush3.bf16.msk.msra.mxu1 %vm2304_vm7, %v2303_v16  ;;  %2169 = vmatprep.mubr.msk.f32.mxu1 %vm339_vm8, %v322_v18 }
  0xe8   :  { %2318 = vmatprep.subr.bf16.mxu1 %v2463_v0 }
  0xea   :  { %2170 = vmatmul.mubr.msk.f32.vlgmr.msra.gmra.mrb[2].mxu1 %vm339_vm8, %v323_v20 }
  0xeb   :  { %2320 = vmatpush3.bf16.msra.mxu1 %v2631_v22  ;;  %2172 = vmatprep.mubr.msk.f32.mxu1 %vm339_vm8, %v324_v7 }
  0xec   :  { %2324 = vmatprep.subr.bf16.mxu1 %v2463_v0 }
  0xee   :  { %2173 = vmatmul.mubr.msk.f32.gmra.mrb[4].mxu1 %vm339_vm8, %v325_v8 }
 0x1b9   :  { %v235_v24 = vpop.f32.mrb[0].mxu1 }
 0x1ba   :  { %v236_v25 = vadd.f32 %v2027_v23, %v235_v24  ;;  %v2159_v26 = vpop.f32.mrb[1].mxu1 }
 0x1bc   :  { %v239_v27 = vmax.f32 %v236_v25, 0.0 }
 0x1bd   :  { %v2171_v29 = vpop.f32.mrb[2].mxu1 }
 0x1be   :  { %2163 = vmatmul.mubr.msk.f32.vlgmr.msra.gmra.mrb[2].mxu0 %vm248_vm9, %v239_v27  ;;  %v428_v30 = vpop.f32.mrb[3].mxu1  ;;  %v434_v55 = vadd.f32 %v2171_v29, %v2653_v31 }
 0x1bf   :  { %2311 = vmatpush3.bf16.msra.mxu0 %v2631_v22  ;;  %2182 = vmatprep.mubr.msk.f32.mxu0 %vm2465_vm3, %v2466_v4  ;;  %v429_v34 = vadd.f32 %v2653_v31, %v428_v30  ;;  %v326_v30 = vld [vmem:[%s2890_s1 + $0x20] sm:$0xff] }
 0x1c0   :  { %2312 = vmatprep.subr.bf16.mxu0 %v2463_v0  ;;  %2175 = vmatprep.mubr.msk.f32.mxu1 %vm339_vm8, %v326_v30 }
 0x1c1   :  { %v2174_v12 = vpop.f32.mrb[4].mxu1 }
 0x1c2   :  { %2183 = vmatmul.mubr.msk.f32.vlgmr.msra.gmra.mrb[4].mxu0 %vm165_vm5, %v457_v28  ;;  %v438_v13 = vpop.f32.mrb[5].mxu1 }
 0x1c3   :  { %2314 = vmatpush3.bf16.msra.mxu0 %v2631_v22  ;;  %2189 = vmatprep.mubr.msk.f32.mxu0 %vm2465_vm3, %v2466_v4  ;;  %v439_v15 = vadd.f32 %v2653_v31, %v438_v13 }
 0x1c4   :  { %2315 = vmatprep.subr.bf16.mxu0 %v2463_v0 }
 0x291   :  { %v318_v32 = vpop.f32.mrb[2].mxu0 }
 0x292   :  { %v2164_v33 = vpop.f32.mrb[3].mxu0  ;;  %v2660_v40 = vadd.f32 %v2029_v39, %v318_v32  ;;  %v327_v32 = vld [vmem:[%s2890_s1 + $0x28] sm:$0xff]  ;;  %v444_v39 = vadd.f32 %v2174_v12, %v2653_v31 }
 0x293   :  { %2176 = vmatmul.mubr.msk.f32.gmra.mrb[6].mxu1 %vm339_vm8, %v327_v32 }
 0x294   :  { %2203 = vmatprep.mubr.msk.f32.mxu1 %vm2465_vm3, %v2466_v4 }
 0x295   :  { %v527_v35 = vpop.f32.mrb[4].mxu0 }
 0x296   :  { %v531_v36 = vadd.f32 %v527_v35, %v429_v34  ;;  %v2184_v37 = vpop.f32.mrb[5].mxu0 }
 0x298   :  { %2367 = vtanh.f32 %v531_v36  ;;  %v2040_v41 = vmul.f32 -1.442695, %v531_v36 }
 0x29a   :  { %2369 = vpow2.f32 %v2040_v41 }
 0x2a2   :  { %v2368_v38 = vpop.eup %2367 }
 0x2a3   :  { %545 = vrot.lane.b32.xlu0 %v2368_v38, %s2467_s4 }
 0x2a4   :  { %v2370_v42 = vpop.eup %2369 }
 0x2a5   :  { %v535_v43 = vadd.f32 1.0, %v2370_v42 }
 0x2a7   :  { %540 = vrot.lane.b32.xlu0 %v2660_v40, %s2468_s11  ;;  %2371 = vrcp.f32 %v535_v43 }
 0x2b1   :  { %v2372_v44 = vpop.eup %2371 }
 0x315   :  { %v546_v45 = vpop.permute.xlu0 %545 }
 0x316   :  { %v548_v46 = vmul.f32 %v2372_v44, %v546_v45 }
 0x318   :  { %550 = vrot.lane.b32.xlu1 %v548_v46, %s2468_s11 }
 0x319   :  { %v2665_v47 = vpop.permute.xlu0 %540 }
 0x31a   :  { %v543_v48 = vmul.f32 %v2372_v44, %v2665_v47 }
 0x366   :  { %v2713_v36 = vpop.f32.mrb[6].mxu1 }
 0x367   :  { %v448_v37 = vpop.f32.mrb[7].mxu1 }
 0x38a   :  { %v551_v49 = vpop.permute.xlu1 %550 }
 0x38b   :  { %v553_v50 = vadd.f32 %v551_v49, %v543_v48 }
 0x38d   :  { %2373 = vtanh.f32 %v553_v50 }
 0x397   :  { %v2374_v51 = vpop.eup %2373 }
 0x398   :  { %556 = vrot.lane.b32.xlu1 %v2374_v51, %s2469_s8 }
 0x40a   :  { %v557_v52 = vpop.permute.xlu1 %556 }
 0x40b   :  { %v559_v53 = vmul.f32 %v2372_v44, %v557_v52 }
 0x40d   :  { %561 = vrot.lane.b32.xlu0 %v559_v53, %s2470_s26 }
 0x47f   :  { %v2670_v54 = vpop.permute.xlu0 %561 }
 0x480   :  { %2190 = vmatmul.mubr.msk.f32.vlgmr.msra.gmra.mrb[6].mxu0 %vm165_vm5, %v2670_v54 }
 0x481   :  { %2317 = vmatpush3.bf16.msra.mxu0 %v2631_v22  ;;  %2196 = vmatprep.mubr.msk.f32.mxu0 %vm2465_vm3, %v2466_v4 }
 0x482   :  { %2321 = vmatprep.subr.bf16.mxu0 %v2463_v0 }
 0x553   :  { %v631_v56 = vpop.f32.mrb[6].mxu0 }
 0x554   :  { %v635_v57 = vadd.f32 %v631_v56, %v434_v55  ;;  %v2191_v58 = vpop.f32.mrb[7].mxu0  ;;  %v1060_v56 = vld [vmem:[%s2896_s12] sm:$0xff] }
 0x556   :  { %2375 = vtanh.f32 %v635_v57  ;;  %v2042_v60 = vmul.f32 -1.442695, %v635_v57  ;;  %v1061_v57 = vld [vmem:[%s2896_s12 + $0x8] sm:$0xff] }
 0x557   :  { %v2327_v58 = vpack.c.bf16 %v1061_v57, %v1060_v56 }
 0x558   :  { %2377 = vpow2.f32 %v2042_v60 }
 0x560   :  { %v2376_v59 = vpop.eup %2375 }
 0x561   :  { %645 = vrot.lane.b32.xlu1 %v2376_v59, %s2467_s4 }
 0x562   :  { %v2378_v61 = vpop.eup %2377 }
 0x563   :  { %v639_v62 = vadd.f32 1.0, %v2378_v61 }
 0x565   :  { %2379 = vrcp.f32 %v639_v62  ;;  %v449_v62 = vadd.f32 %v2653_v31, %v448_v37 }
 0x56f   :  { %v2380_v63 = vpop.eup %2379 }
 0x570   :  { %v643_v3 = vmul.f32 %v2380_v63, %v553_v50 }
 0x5d3   :  { %v646_v1 = vpop.permute.xlu1 %645 }
 0x5d4   :  { %v648_v2 = vmul.f32 %v2380_v63, %v646_v1 }
 0x5d6   :  { %650 = vrot.lane.b32.xlu0 %v648_v2, %s2468_s11 }
 0x648   :  { %v651_v5 = vpop.permute.xlu0 %650 }
 0x649   :  { %v653_v6 = vadd.f32 %v651_v5, %v643_v3 }
 0x64b   :  { %2381 = vtanh.f32 %v653_v6 }
 0x655   :  { %v2382_v9 = vpop.eup %2381 }
 0x656   :  { %656 = vrot.lane.b32.xlu1 %v2382_v9, %s2469_s8 }
 0x6c8   :  { %v657_v10 = vpop.permute.xlu1 %656 }
 0x6c9   :  { %v659_v11 = vmul.f32 %v2380_v63, %v657_v10 }
 0x6cb   :  { %661 = vrot.lane.b32.xlu0 %v659_v11, %s2470_s26 }
 0x73d   :  { %v2691_v14 = vpop.permute.xlu0 %661 }
 0x73e   :  { %2197 = vmatmul.mubr.msk.f32.vlgmr.msra.gmra.mrb[8].mxu0 %vm165_vm5, %v2691_v14 }
 0x73f   :  { %2323 = vmatpush3.bf16.msra.mxu0 %v2631_v22  ;;  %2210 = vmatprep.mubr.msk.f32.mxu0 %vm2465_vm3, %v2466_v4 }
 0x740   :  { %2328 = vmatprep.subr.bf16.mxu0 %v2327_v58 }
 0x811   :  { %v731_v16 = vpop.f32.mrb[8].mxu0 }
 0x812   :  { %v735_v17 = vadd.f32 %v731_v16, %v439_v15  ;;  %v2198_v18 = vpop.f32.mrb[9].mxu0 }
 0x813   :  { %v1062_v18 = vld [vmem:[%s2897_s13] sm:$0xff] }
 0x814   :  { %2383 = vtanh.f32 %v735_v17  ;;  %v2044_v20 = vmul.f32 -1.442695, %v735_v17 }
 0x816   :  { %2385 = vpow2.f32 %v2044_v20 }
 0x81e   :  { %v2384_v19 = vpop.eup %2383 }
 0x81f   :  { %745 = vrot.lane.b32.xlu1 %v2384_v19, %s2467_s4  ;;  %v1063_v19 = vld [vmem:[%s2897_s13 + $0x8] sm:$0xff] }
 0x820   :  { %v2386_v21 = vpop.eup %2385  ;;  %v2758_v20 = vpack.c.bf16 %v1063_v19, %v1062_v18 }
 0x821   :  { %v739_v23 = vadd.f32 1.0, %v2386_v21 }
 0x823   :  { %2387 = vrcp.f32 %v739_v23 }
 0x82d   :  { %v2388_v24 = vpop.eup %2387 }
 0x82e   :  { %v743_v27 = vmul.f32 %v2388_v24, %v653_v6 }
 0x891   :  { %v746_v25 = vpop.permute.xlu1 %745 }
 0x892   :  { %v748_v26 = vmul.f32 %v2388_v24, %v746_v25  ;;  %v2058_v25 = vld [vmem:[%s2893_s2 + $0x8] sm:$0xff] }
 0x894   :  { %750 = vrot.lane.b32.xlu0 %v748_v26, %s2468_s11  ;;  %v454_v26 = vadd.f32 %v2713_v36, %v2653_v31 }
 0x906   :  { %v751_v28 = vpop.permute.xlu0 %750 }
 0x907   :  { %v753_v29 = vadd.f32 %v751_v28, %v743_v27  ;;  %v2782_v27 = vld [vmem:[%s2898_s14] ss:$0 sm:$0xff] }
 0x909   :  { %2389 = vtanh.f32 %v753_v29 }
 0x913   :  { %v2390_v33 = vpop.eup %2389 }
 0x914   :  { %756 = vrot.lane.b32.xlu1 %v2390_v33, %s2469_s8 }
 0x986   :  { %v757_v34 = vpop.permute.xlu1 %756 }
 0x987   :  { %v759_v35 = vmul.f32 %v2388_v24, %v757_v34 }
 0x989   :  { %761 = vrot.lane.b32.xlu0 %v759_v35, %s2470_s26 }
 0x9fb   :  { %v762_v38 = vpop.permute.xlu0 %761 }
 0x9fc   :  { %2204 = vmatmul.mubr.msk.f32.vlgmr.msra.gmra.mrb[8].mxu1 %vm165_vm5, %v762_v38 }
 0x9fd   :  { %2326 = vmatpush3.bf16.msra.mxu1 %v2631_v22  ;;  %2217 = vmatprep.mubr.msk.f32.mxu1 %vm2465_vm3, %v2466_v4 }
 0x9fe   :  { %2331 = vmatprep.subr.bf16.mxu1 %v2463_v0 }
 0xacf   :  { %v831_v41 = vpop.f32.mrb[8].mxu1 }
 0xad0   :  { %v835_v42 = vadd.f32 %v831_v41, %v444_v39  ;;  %v2205_v43 = vpop.f32.mrb[9].mxu1 }
 0xad2   :  { %2391 = vtanh.f32 %v835_v42  ;;  %v2046_v45 = vmul.f32 -1.442695, %v835_v42 }
 0xad4   :  { %2393 = vpow2.f32 %v2046_v45 }
 0xadc   :  { %v2392_v44 = vpop.eup %2391 }
 0xadd   :  { %845 = vrot.lane.b32.xlu1 %v2392_v44, %s2467_s4 }
 0xade   :  { %v2394_v46 = vpop.eup %2393 }
 0xadf   :  { %v839_v48 = vadd.f32 1.0, %v2394_v46 }
 0xae1   :  { %2395 = vrcp.f32 %v839_v48 }
 0xaeb   :  { %v2396_v22 = vpop.eup %2395 }
 0xaec   :  { %v843_v51 = vmul.f32 %v2396_v22, %v753_v29 }
 0xb4f   :  { %v846_v49 = vpop.permute.xlu1 %845 }
 0xb50   :  { %v848_v50 = vmul.f32 %v2396_v22, %v846_v49 }
 0xb52   :  { %850 = vrot.lane.b32.xlu0 %v848_v50, %s2468_s11 }
 0xbc4   :  { %v851_v52 = vpop.permute.xlu0 %850 }
 0xbc5   :  { %v853_v53 = vadd.f32 %v851_v52, %v843_v51 }
 0xbc7   :  { %2397 = vtanh.f32 %v853_v53 }
 0xbd1   :  { %v2398_v55 = vpop.eup %2397 }
 0xbd2   :  { %856 = vrot.lane.b32.xlu1 %v2398_v55, %s2469_s8 }
 0xc44   :  { %v857_v59 = vpop.permute.xlu1 %856 }
 0xc45   :  { %v859_v60 = vmul.f32 %v2396_v22, %v857_v59 }
 0xc47   :  { %861 = vrot.lane.b32.xlu0 %v859_v60, %s2470_s26 }
 0xcb9   :  { %v862_v61 = vpop.permute.xlu0 %861 }
 0xcba   :  { %2211 = vmatmul.mubr.msk.f32.vlgmr.msra.gmra.mrb[10].mxu0 %vm165_vm5, %v862_v61 }
 0xcbb   :  { %2330 = vmatpush3.bf16.msra.mxu0 %v2327_v58  ;;  %2224 = vmatprep.mubr.msk.f32.mxu0 %vm165_vm5, %v2670_v54 }
 0xcbc   :  { %2340 = vmatprep.subr.bf16.mxu0 %v2463_v0 }
 0xcbe   :  { %2225 = vmatmul.mubr.msk.f32.vlgmr.msra.gmra.mrb[12].mxu0 %vm165_vm5, %v2691_v14 }
 0xcbf   :  { %2227 = vmatprep.mubr.msk.f32.mxu0 %vm165_vm5, %v762_v38  ;;  %2342 = vmatpush3.bf16.msra.mxu0 %v2758_v20 }
 0xcc0   :  { %2346 = vmatprep.subr.bf16.mxu0 %v2463_v0 }
 0xcc2   :  { %2228 = vmatmul.mubr.msk.f32.gmra.mrb[14].mxu0 %vm165_vm5, %v862_v61 }
 0xd8d   :  { %v931_v63 = vpop.f32.mrb[10].mxu0 }
 0xd8e   :  { %v935_v1 = vadd.f32 %v931_v63, %v449_v62  ;;  %v2212_v2 = vpop.f32.mrb[11].mxu0 }
 0xd90   :  { %2399 = vtanh.f32 %v935_v1  ;;  %v2048_v8 = vmul.f32 -1.442695, %v935_v1 }
 0xd91   :  { %v2740_v3 = vpop.f32.mrb[12].mxu0 }
 0xd92   :  { %v1142_v5 = vpop.f32.mrb[13].mxu0  ;;  %2401 = vpow2.f32 %v2048_v8 }
 0xd93   :  { %v1143_v32 = vadd.f32 %v2782_v27, %v1142_v5 }
 0xd95   :  { %v2742_v6 = vpop.f32.mrb[14].mxu0 }
 0xd96   :  { %v2744_v54 = vpop.f32.mrb[15].mxu0 }
 0xd9a   :  { %v2400_v7 = vpop.eup %2399 }
 0xd9b   :  { %945 = vrot.lane.b32.xlu1 %v2400_v7, %s2467_s4 }
 0xd9c   :  { %v2402_v9 = vpop.eup %2401 }
 0xd9d   :  { %v939_v10 = vadd.f32 1.0, %v2402_v9 }
 0xd9f   :  { %2403 = vrcp.f32 %v939_v10 }
 0xda9   :  { %v2404_v11 = vpop.eup %2403 }
 0xdaa   :  { %v943_v14 = vmul.f32 %v2404_v11, %v853_v53 }
 0xe0d   :  { %v946_v12 = vpop.permute.xlu1 %945 }
 0xe0e   :  { %v948_v13 = vmul.f32 %v2404_v11, %v946_v12 }
 0xe10   :  { %950 = vrot.lane.b32.xlu0 %v948_v13, %s2468_s11 }
 0xe82   :  { %v951_v15 = vpop.permute.xlu0 %950 }
 0xe83   :  { %v2748_v16 = vadd.f32 %v951_v15, %v943_v14 }
 0xe85   :  { %2405 = vtanh.f32 %v2748_v16 }
 0xe8f   :  { %v2406_v17 = vpop.eup %2405 }
 0xe90   :  { %956 = vrot.lane.b32.xlu1 %v2406_v17, %s2469_s8 }
 0xf02   :  { %v957_v21 = vpop.permute.xlu1 %956 }
 0xf03   :  { %v959_v23 = vmul.f32 %v2404_v11, %v957_v21 }
 0xf05   :  { %961 = vrot.lane.b32.xlu0 %v959_v23, %s2470_s26  ;;  %v1153_v23 = vadd.f32 %v2782_v27, %v2744_v54 }
 0xf77   :  { %v962_v24 = vpop.permute.xlu0 %961 }
 0xf78   :  { %2218 = vmatmul.mubr.msk.f32.vlgmr.msra.gmra.mrb[10].mxu1 %vm165_vm5, %v962_v24  ;;  %2230 = vmatprep.mubr.msk.f32.mxu0 %vm165_vm5, %v962_v24 }
 0xf79   :  { %2333 = vmatpush3.bf16.msra.mxu1 %v2758_v20  ;;  %2237 = vmatprep.mubr.msk.f32.mxu1 %vm2465_vm3, %v2466_v4 }
 0xf7a   :  { %2334 = vmatprep.subr.bf16.mxu1 %v2463_v0 }
 0xf7c   :  { %2238 = vmatmul.mubr.msk.f32.vlgmr.msra.gmra.mrb[12].mxu1 %vm165_vm5, %v2058_v25 }
 0xf7d   :  { %2336 = vmatpush3.bf16.msra.mxu1 %v2758_v20  ;;  %2244 = vmatprep.mubr.msk.f32.mxu1 %vm2465_vm3, %v2466_v4 }
 0xf7e   :  { %2337 = vmatprep.subr.bf16.mxu1 %v2463_v0 }
0x104b   :  { %v1031_v28 = vpop.f32.mrb[10].mxu1 }
0x104c   :  { %v1035_v29 = vadd.f32 %v1031_v28, %v454_v26  ;;  %v2219_v30 = vpop.f32.mrb[11].mxu1 }
0x104f   :  { %v1242_v33 = vpop.f32.mrb[12].mxu1 }
0x1050   :  { %v1246_v34 = vadd.f32 %v1242_v33, %v1143_v32  ;;  %v2239_v35 = vpop.f32.mrb[13].mxu1 }
0x1052   :  { %2407 = vtanh.f32 %v1246_v34  ;;  %v2060_v38 = vmul.f32 -1.442695, %v1246_v34 }
0x1054   :  { %2409 = vpow2.f32 %v2060_v38 }
0x105c   :  { %v2408_v37 = vpop.eup %2407 }
0x105d   :  { %1256 = vrot.lane.b32.xlu1 %v2408_v37, %s2467_s4 }
0x105e   :  { %v2410_v31 = vpop.eup %2409 }
0x105f   :  { %v1250_v36 = vadd.f32 1.0, %v2410_v31 }
0x1061   :  { %2411 = vrcp.f32 %v1250_v36 }
0x106b   :  { %v2412_v39 = vpop.eup %2411 }
0x106c   :  { %v1254_v43 = vmul.f32 %v2412_v39, %v2665_v47  ;;  %v1148_v47 = vadd.f32 %v2740_v3, %v2782_v27  ;;  %v2050_v3 = vmul.f32 -1.442695, %v1035_v29 }
0x10cf   :  { %v1257_v41 = vpop.permute.xlu1 %1256 }
0x10d0   :  { %v1259_v42 = vmul.f32 %v2412_v39, %v1257_v41 }
0x10d2   :  { %1261 = vrot.lane.b32.xlu0 %v1259_v42, %s2468_s11 }
0x1144   :  { %v1262_v44 = vpop.permute.xlu0 %1261 }
0x1145   :  { %v1264_v45 = vadd.f32 %v1262_v44, %v1254_v43  ;;  %v1158_v44 = vadd.f32 %v2742_v6, %v2782_v27 }
0x1147   :  { %2413 = vtanh.f32 %v1264_v45 }
0x1151   :  { %v2414_v46 = vpop.eup %2413 }
0x1152   :  { %1267 = vrot.lane.b32.xlu1 %v2414_v46, %s2469_s8 }
0x11c4   :  { %v1268_v48 = vpop.permute.xlu1 %1267 }
0x11c5   :  { %v1270_v22 = vmul.f32 %v2412_v39, %v1268_v48 }
0x11c7   :  { %1272 = vrot.lane.b32.xlu0 %v1270_v22, %s2470_s26 }
0x1239   :  { %v1273_v49 = vpop.permute.xlu0 %1272 }
0x123a   :  { %2245 = vmatmul.mubr.msk.f32.vlgmr.msra.gmra.mrb[14].mxu1 %vm165_vm5, %v1273_v49 }
0x123b   :  { %2339 = vmatpush3.bf16.msra.mxu1 %v2758_v20  ;;  %2251 = vmatprep.mubr.msk.f32.mxu1 %vm2465_vm3, %v2466_v4 }
0x123c   :  { %2343 = vmatprep.subr.bf16.mxu1 %v2463_v0 }
0x130d   :  { %v1342_v50 = vpop.f32.mrb[14].mxu1 }
0x130e   :  { %v1346_v51 = vadd.f32 %v1342_v50, %v1148_v47  ;;  %v2246_v52 = vpop.f32.mrb[15].mxu1 }
0x1310   :  { %2415 = vtanh.f32 %v1346_v51  ;;  %v2062_v55 = vmul.f32 -1.442695, %v1346_v51 }
0x1312   :  { %2417 = vpow2.f32 %v2062_v55 }
0x131a   :  { %v2416_v53 = vpop.eup %2415 }
0x131b   :  { %1356 = vrot.lane.b32.xlu1 %v2416_v53, %s2467_s4 }
0x131c   :  { %v2418_v56 = vpop.eup %2417 }
0x131d   :  { %v1350_v57 = vadd.f32 1.0, %v2418_v56 }
0x131f   :  { %2419 = vrcp.f32 %v1350_v57 }
0x1329   :  { %v2420_v58 = vpop.eup %2419 }
0x132a   :  { %v1354_v61 = vmul.f32 %v2420_v58, %v1264_v45 }
0x138d   :  { %v1357_v59 = vpop.permute.xlu1 %1356 }
0x138e   :  { %v1359_v60 = vmul.f32 %v2420_v58, %v1357_v59 }
0x1390   :  { %1361 = vrot.lane.b32.xlu0 %v1359_v60, %s2468_s11 }
0x1402   :  { %v1362_v62 = vpop.permute.xlu0 %1361 }
0x1403   :  { %v1364_v63 = vadd.f32 %v1362_v62, %v1354_v61 }
0x1405   :  { %2421 = vtanh.f32 %v1364_v63 }
0x1406   :  { %2423 = vtanh.f32 %v1035_v29 }
0x1407   :  { %2425 = vpow2.f32 %v2050_v3 }
0x140f   :  { %v2422_v1 = vpop.eup %2421 }
0x1410   :  { %1367 = vrot.lane.b32.xlu1 %v2422_v1, %s2469_s8  ;;  %v2424_v2 = vpop.eup %2423 }
0x1411   :  { %v2426_v5 = vpop.eup %2425 }
0x1412   :  { %v1039_v7 = vadd.f32 1.0, %v2426_v5 }
0x1414   :  { %1045 = vrot.lane.b32.xlu1 %v2424_v2, %s2467_s4  ;;  %2427 = vrcp.f32 %v1039_v7 }
0x141e   :  { %v2428_v10 = vpop.eup %2427 }
0x141f   :  { %v1043_v14 = vmul.f32 %v2428_v10, %v2748_v16 }
0x1482   :  { %v1368_v8 = vpop.permute.xlu1 %1367 }
0x1483   :  { %v1370_v9 = vmul.f32 %v2420_v58, %v1368_v8 }
0x1485   :  { %1372 = vrot.lane.b32.xlu0 %v1370_v9, %s2470_s26 }
0x1486   :  { %v1046_v11 = vpop.permute.xlu1 %1045 }
0x1487   :  { %v1048_v12 = vmul.f32 %v2428_v10, %v1046_v11 }
0x1489   :  { %1050 = vrot.lane.b32.xlu1 %v1048_v12, %s2468_s11 }
0x14f7   :  { %v1373_v13 = vpop.permute.xlu0 %1372 }
0x14f8   :  { %2252 = vmatmul.mubr.msk.f32.vlgmr.msra.gmra.mrb[16].mxu1 %vm165_vm5, %v1373_v13 }
0x14f9   :  { %2345 = vmatpush3.bf16.msra.mxu1 %v2758_v20  ;;  %2265 = vmatprep.mubr.msk.f32.mxu1 %vm2465_vm3, %v2466_v4 }
0x14fa   :  { %2349 = vmatprep.subr.bf16.mxu1 %v2463_v0 }
0x14fb   :  { %v1051_v15 = vpop.permute.xlu1 %1050 }
0x14fc   :  { %v1053_v17 = vadd.f32 %v1051_v15, %v1043_v14 }
0x14fe   :  { %2429 = vtanh.f32 %v1053_v17  ;;  %v1771_v17 = vld [vmem:[%s2899_s15] sm:$0xff] }
0x1508   :  { %v2430_v18 = vpop.eup %2429 }
0x1509   :  { %1056 = vrot.lane.b32.xlu1 %v2430_v18, %s2469_s8  ;;  %v1772_v18 = vld [vmem:[%s2899_s15 + $0x8] sm:$0xff] }
0x157b   :  { %v1057_v19 = vpop.permute.xlu1 %1056 }
0x157c   :  { %v1059_v21 = vmul.f32 %v2428_v10, %v1057_v19  ;;  %v2353_v19 = vpack.c.bf16 %v1772_v18, %v1771_v17 }
0x157e   :  { %1072 = vrot.lane.b32.xlu1 %v1059_v21, %s2470_s26 }
0x15cb   :  { %v1442_v24 = vpop.f32.mrb[16].mxu1 }
0x15cc   :  { %v1446_v25 = vadd.f32 %v1442_v24, %v1153_v23  ;;  %v2253_v26 = vpop.f32.mrb[17].mxu1 }
0x15ce   :  { %2431 = vtanh.f32 %v1446_v25  ;;  %v2064_v29 = vmul.f32 -1.442695, %v1446_v25 }
0x15d0   :  { %2433 = vpow2.f32 %v2064_v29 }
0x15d8   :  { %v2432_v16 = vpop.eup %2431 }
0x15d9   :  { %1456 = vrot.lane.b32.xlu0 %v2432_v16, %s2467_s4 }
0x15da   :  { %v2434_v30 = vpop.eup %2433 }
0x15db   :  { %v1450_v32 = vadd.f32 1.0, %v2434_v30 }
0x15dd   :  { %2435 = vrcp.f32 %v1450_v32 }
0x15e7   :  { %v2436_v33 = vpop.eup %2435 }
0x15e8   :  { %v1454_v35 = vmul.f32 %v2436_v33, %v1364_v63 }
0x15f0   :  { %v1073_v28 = vpop.permute.xlu1 %1072 }
0x15f1   :  { %2231 = vmatmul.mubr.msk.f32.gmra.mrb[16].mxu0 %vm165_vm5, %v1073_v28 }
0x15f2   :  { %2258 = vmatprep.mubr.msk.f32.mxu0 %vm2465_vm3, %v2466_v4 }
0x164b   :  { %v1457_v54 = vpop.permute.xlu0 %1456 }
0x164c   :  { %v1459_v34 = vmul.f32 %v2436_v33, %v1457_v54 }
0x164e   :  { %1461 = vrot.lane.b32.xlu0 %v1459_v34, %s2468_s11 }
0x16c0   :  { %v1462_v37 = vpop.permute.xlu0 %1461 }
0x16c1   :  { %v1464_v38 = vadd.f32 %v1462_v37, %v1454_v35 }
0x16c3   :  { %2437 = vtanh.f32 %v1464_v38 }
0x16c4   :  { %v2818_v31 = vpop.f32.mrb[16].mxu0 }
0x16c5   :  { %v1162_v36 = vpop.f32.mrb[17].mxu0  ;;  %v1168_v23 = vadd.f32 %v2818_v31, %v2782_v27  ;;  %v1774_v31 = vld [vmem:[%s2900_s16 + $0x8] sm:$0xff] }
0x16c6   :  { %v1163_v60 = vadd.f32 %v2782_v27, %v1162_v36 }
0x16cd   :  { %v2438_v39 = vpop.eup %2437 }
0x16ce   :  { %1467 = vrot.lane.b32.xlu0 %v2438_v39, %s2469_s8 }
0x1740   :  { %v1468_v41 = vpop.permute.xlu0 %1467 }
0x1741   :  { %v1470_v42 = vmul.f32 %v2436_v33, %v1468_v41 }
0x1743   :  { %1472 = vrot.lane.b32.xlu0 %v1470_v42, %s2470_s26 }
0x17b5   :  { %v1473_v43 = vpop.permute.xlu0 %1472 }
0x17b6   :  { %2259 = vmatmul.mubr.msk.f32.vlgmr.msra.gmra.mrb[18].mxu0 %vm165_vm5, %v1473_v43 }
0x17b7   :  { %2348 = vmatpush3.bf16.msra.mxu0 %v2758_v20  ;;  %2272 = vmatprep.mubr.msk.f32.mxu0 %vm2465_vm3, %v2466_v4 }
0x17b8   :  { %2352 = vmatprep.subr.bf16.mxu0 %v2463_v0 }
0x1889   :  { %v1542_v45 = vpop.f32.mrb[18].mxu0 }
0x188a   :  { %v1546_v46 = vadd.f32 %v1542_v45, %v1158_v44  ;;  %v2260_v48 = vpop.f32.mrb[19].mxu0  ;;  %v1931_v44 = vld [vmem:[%s2901_s18] sm:$0xff] }
0x188c   :  { %2439 = vtanh.f32 %v1546_v46  ;;  %v2066_v49 = vmul.f32 -1.442695, %v1546_v46  ;;  %v25_v46 = vstv %s2902_s19 }
0x188d   :  { %26 = vst [vmem:[#allocation2] sm:$0x1] %v25_v46 }
0x188e   :  { %2441 = vpow2.f32 %v2066_v49 }
0x1896   :  { %v2440_v22 = vpop.eup %2439 }
0x1897   :  { %1556 = vrot.lane.b32.xlu1 %v2440_v22, %s2467_s4 }
0x1898   :  { %v2442_v47 = vpop.eup %2441 }
0x1899   :  { %v1550_v50 = vadd.f32 1.0, %v2442_v47 }
0x189b   :  { %2443 = vrcp.f32 %v1550_v50 }
0x18a5   :  { %v2444_v20 = vpop.eup %2443 }
0x18a6   :  { %v1554_v53 = vmul.f32 %v2444_v20, %v1464_v38  ;;  %v1773_v38 = vld [vmem:[%s2900_s16] sm:$0xff] }
0x18a7   :  { %v2350_v36 = vpack.c.bf16 %v1774_v31, %v1773_v38 }
0x1909   :  { %v1557_v51 = vpop.permute.xlu1 %1556 }
0x190a   :  { %v1559_v52 = vmul.f32 %v2444_v20, %v1557_v51 }
0x190c   :  { %1561 = vrot.lane.b32.xlu0 %v1559_v52, %s2468_s11 }
0x197e   :  { %v1562_v55 = vpop.permute.xlu0 %1561 }
0x197f   :  { %v1564_v6 = vadd.f32 %v1562_v55, %v1554_v53 }
0x1981   :  { %2445 = vtanh.f32 %v1564_v6 }
0x198b   :  { %v2446_v56 = vpop.eup %2445 }
0x198c   :  { %1567 = vrot.lane.b32.xlu1 %v2446_v56, %s2469_s8 }
0x19fe   :  { %v1568_v57 = vpop.permute.xlu1 %1567 }
0x19ff   :  { %v1570_v58 = vmul.f32 %v2444_v20, %v1568_v57  ;;  %v2074_v20 = vld [vmem:[#allocation2] ss:$0 sm:$0xff] }
0x1a01   :  { %1572 = vrot.lane.b32.xlu0 %v1570_v58, %s2470_s26 }
0x1a73   :  { %v1573_v59 = vpop.permute.xlu0 %1572 }
0x1a74   :  { %2266 = vmatmul.mubr.msk.f32.vlgmr.msra.gmra.mrb[18].mxu1 %vm165_vm5, %v1573_v59 }
0x1a75   :  { %2279 = vmatprep.mubr.msk.f32.mxu1 %vm2465_vm3, %v2466_v4  ;;  %2351 = vmatpush3.bf16.msra.mxu1 %v2350_v36 }
0x1a76   :  { %2355 = vmatprep.subr.bf16.mxu1 %v2463_v0  ;;  %v1932_v0 = vld [vmem:[%s2901_s18 + $0x8] sm:$0x3] }
0x1a77   :  { %v2356_v45 = vpack.c.bf16 %v1932_v0, %v1931_v44 }
0x1b47   :  { %v1642_v61 = vpop.f32.mrb[18].mxu1 }
0x1b48   :  { %v1646_v62 = vadd.f32 %v1642_v61, %v1163_v60  ;;  %v2267_v63 = vpop.f32.mrb[19].mxu1 }
0x1b4a   :  { %2447 = vtanh.f32 %v1646_v62  ;;  %v2068_v2 = vmul.f32 -1.442695, %v1646_v62 }
0x1b4c   :  { %2449 = vpow2.f32 %v2068_v2 }
0x1b54   :  { %v2448_v1 = vpop.eup %2447 }
0x1b55   :  { %1656 = vrot.lane.b32.xlu1 %v2448_v1, %s2467_s4 }
0x1b56   :  { %v2450_v3 = vpop.eup %2449 }
0x1b57   :  { %v1650_v5 = vadd.f32 1.0, %v2450_v3 }
0x1b59   :  { %2451 = vrcp.f32 %v1650_v5 }
0x1b63   :  { %v2452_v7 = vpop.eup %2451 }
0x1b64   :  { %v1654_v10 = vmul.f32 %v2452_v7, %v1564_v6 }
0x1bc7   :  { %v1657_v8 = vpop.permute.xlu1 %1656 }
0x1bc8   :  { %v1659_v9 = vmul.f32 %v2452_v7, %v1657_v8 }
0x1bca   :  { %1661 = vrot.lane.b32.xlu0 %v1659_v9, %s2468_s11 }
0x1c3c   :  { %v1662_v11 = vpop.permute.xlu0 %1661 }
0x1c3d   :  { %v1664_v12 = vadd.f32 %v1662_v11, %v1654_v10 }
0x1c3f   :  { %2453 = vtanh.f32 %v1664_v12 }
0x1c49   :  { %v2454_v13 = vpop.eup %2453 }
0x1c4a   :  { %1667 = vrot.lane.b32.xlu1 %v2454_v13, %s2469_s8 }
0x1cbc   :  { %v1668_v14 = vpop.permute.xlu1 %1667 }
0x1cbd   :  { %v1670_v15 = vmul.f32 %v2452_v7, %v1668_v14 }
0x1cbf   :  { %1672 = vrot.lane.b32.xlu0 %v1670_v15, %s2470_s26 }
0x1d31   :  { %v1673_v21 = vpop.permute.xlu0 %1672 }
0x1d32   :  { %2273 = vmatmul.mubr.msk.f32.vlgmr.msra.gmra.mrb[20].mxu0 %vm165_vm5, %v1673_v21 }
0x1d33   :  { %2354 = vmatpush3.bf16.msra.mxu0 %v2353_v19  ;;  %2286 = vmatprep.mubr.msk.f32.mxu0 %vm2465_vm3, %v2466_v4 }
0x1d36   :  { %2287 = vmatmul.mubr.msk.f32.vlgmr.msra.gmra.mrb[22].mxu0 %vm165_vm5, %v2660_v40 }
0x1e05   :  { %v1742_v24 = vpop.f32.mrb[20].mxu0 }
0x1e06   :  { %v1746_v25 = vadd.f32 %v1742_v24, %v1168_v23  ;;  %v2274_v26 = vpop.f32.mrb[21].mxu0 }
0x1e08   :  { %2455 = vtanh.f32 %v1746_v25  ;;  %v2070_v30 = vmul.f32 -1.442695, %v1746_v25 }
0x1e09   :  { %v1918_v16 = vpop.f32.mrb[22].mxu0 }
0x1e0a   :  { %v2288_v28 = vpop.f32.mrb[23].mxu0  ;;  %2457 = vpow2.f32 %v2070_v30 }
0x1e12   :  { %v2456_v29 = vpop.eup %2455 }
0x1e13   :  { %1756 = vrot.lane.b32.xlu1 %v2456_v29, %s2467_s4 }
0x1e14   :  { %v2458_v32 = vpop.eup %2457 }
0x1e15   :  { %v1750_v33 = vadd.f32 1.0, %v2458_v32 }
0x1e17   :  { %2459 = vrcp.f32 %v1750_v33 }
0x1e21   :  { %v2460_v54 = vpop.eup %2459 }
0x1e22   :  { %v1754_v27 = vmul.f32 %v2460_v54, %v1664_v12 }
0x1e85   :  { %v1757_v34 = vpop.permute.xlu1 %1756 }
0x1e86   :  { %v1759_v40 = vmul.f32 %v2460_v54, %v1757_v34 }
0x1e88   :  { %1761 = vrot.lane.b32.xlu0 %v1759_v40, %s2468_s11 }
0x1efa   :  { %v1762_v35 = vpop.permute.xlu0 %1761 }
0x1efb   :  { %v1764_v37 = vadd.f32 %v1762_v35, %v1754_v27 }
0x1efd   :  { %2461 = vtanh.f32 %v1764_v37 }
0x1f07   :  { %v2462_v39 = vpop.eup %2461 }
0x1f08   :  { %1767 = vrot.lane.b32.xlu1 %v2462_v39, %s2469_s8 }
0x1f7a   :  { %v1768_v41 = vpop.permute.xlu1 %1767 }
0x1f7b   :  { %v1770_v42 = vmul.f32 %v2460_v54, %v1768_v41 }
0x1f7d   :  { %1776 = vrot.lane.b32.xlu0 %v1770_v42, %s2470_s26 }
0x1fef   :  { %v1777_v43 = vpop.permute.xlu0 %1776 }
0x1ff0   :  { %2280 = vmatmul.mubr.msk.f32.vlgmr.msra.gmra.mrb[20].mxu1 %vm165_vm5, %v1777_v43 }
0x1ff1   :  { %2293 = vmatprep.mubr.msk.f32.mxu1 %vm2465_vm3, %v2466_v4  ;;  %2358 = vmatpush3.bf16.msk.msra.mxu1 %vm2357_vm11, %v2356_v45  ;;  %v2073_v4 = vld [vmem:[%s2903_s17] ss:$0 sm:$0xff] }
0x20c3   :  { %v1846_v48 = vpop.f32.mrb[20].mxu1 }
0x20c4   :  { %v1919_v22 = vadd.f32 %v1918_v16, %v1846_v48  ;;  %v2281_v49 = vpop.f32.mrb[21].mxu1 }
0x20c6   :  { %v1929_v47 = vadd.f32 %v2073_v4, %v1919_v22 }
0x20c8   :  { %v1930_v50 = vmax.f32 %v1929_v47, 0.0 }
0x20ca   :  { %2294 = vmatmul.mubr.msk.f32.vlgmr.msra.gmra.mrb[22].mxu1 %vm1940_vm12, %v1930_v50 }
0x219d   :  { %v2014_v51 = vpop.f32.mrb[22].mxu1 }
0x219e   :  { %v2015_v52 = vadd.f32 %v2074_v20, %v2014_v51  ;;  %v2295_v53 = vpop.f32.mrb[23].mxu1 }
0x21a0   :  { %2019 = vst.msk [vmem:[%s2904_s20] sm:$0xff] %vm2018_vm13, %v2015_v52 }

</bundles_post_ra>
